<compile_context>
chip_gen: v7x
topology: tpu7x:2x2x1
jax: 0.10.0
libtpu: 0.0.40
codegen_flags: <defaults>
</compile_context>

<pallas_src>
import functools

import jax
import jax.numpy as jnp
from jax.experimental import pallas as pl
from jax.experimental.pallas import tpu as pltpu

HIDDEN = 200       # logical hidden width (matches the torch model)
HIDDEN_PAD = 256   # lane-dense hidden width (zero-padded columns/rows are inert)
OUT_PAD = 128      # lane-dense output width; real outputs live in cols [:dim_out]


def _round_up(x, m):
    return (x + m - 1) // m * m


def _cdiv(a, b):
    return -(-a // b)


# ----------------------------------------------------------------------------- kernel
def policy_kernel(x_ref, w1_ref, b1_ref, w2_ref, b2_ref, w3_ref, b3_ref, o_ref):
    # fc1 + bias + relu.  x arrives f32; the bf16 cast is VALU work hidden under MXU.
    x = x_ref[...].astype(w1_ref.dtype)
    h1 = jnp.dot(x, w1_ref[...], preferred_element_type=jnp.float32)
    h1 = jnp.maximum(h1 + b1_ref[...], 0.0)            # (tb,256) + (1,256), f32
    # fc2 + bias + relu
    h2 = jnp.dot(h1.astype(w2_ref.dtype), w2_ref[...],
                 preferred_element_type=jnp.float32)
    h2 = jnp.maximum(h2 + b2_ref[...], 0.0)
    # fc3 + bias (no activation)
    out = jnp.dot(h2.astype(w3_ref.dtype), w3_ref[...],
                  preferred_element_type=jnp.float32)
    out = out + b3_ref[...]
    o_ref[...] = out.astype(o_ref.dtype)                # lane-dense bf16 store


# ----------------------------------------------------------------------- param packing
def init_policy_params(key, dim_in, dim_out, hidden=HIDDEN):
    """torch.nn.Linear-style init: U(-1/sqrt(fan_in), 1/sqrt(fan_in)).
    Weights stored as (in_features, out_features) so y = x @ W + b."""
    ks = jax.random.split(key, 6)

    def linear(kw, kb, fan_in, fan_out):
        bound = 1.0 / jnp.sqrt(jnp.float32(fan_in))
        w = jax.random.uniform(kw, (fan_in, fan_out), jnp.float32, -bound, bound)
        b = jax.random.uniform(kb, (fan_out,), jnp.float32, -bound, bound)
        return w, b

    w1, b1 = linear(ks[0], ks[1], dim_in, hidden)
    w2, b2 = linear(ks[2], ks[3], hidden, hidden)
    w3, b3 = linear(ks[4], ks[5], hidden, dim_out)
    return {"w1": w1, "b1": b1, "w2": w2, "b2": b2, "w3": w3, "b3": b3}


def pack_policy_params(params, dim_in, dim_out, dtype=jnp.bfloat16):
    """Zero-pad weights to lane-dense shapes (done once, off the hot path).
    Weights are bf16 (native MXU on v5e/v6e/v7x); biases stay f32 row vectors
    so the in-kernel adds run in f32 (v5e VPU has no bf16).  Padded rows/cols
    are zero, so they are inert through ReLU and the next layer."""
    w1 = jnp.zeros((dim_in, HIDDEN_PAD), jnp.float32)
    w1 = w1.at[:, :HIDDEN].set(params["w1"]).astype(dtype)
    b1 = jnp.zeros((1, HIDDEN_PAD), jnp.float32).at[0, :HIDDEN].set(params["b1"])

    w2 = jnp.zeros((HIDDEN_PAD, HIDDEN_PAD), jnp.float32)
    w2 = w2.at[:HIDDEN, :HIDDEN].set(params["w2"]).astype(dtype)
    b2 = jnp.zeros((1, HIDDEN_PAD), jnp.float32).at[0, :HIDDEN].set(params["b2"])

    w3 = jnp.zeros((HIDDEN_PAD, OUT_PAD), jnp.float32)
    w3 = w3.at[:HIDDEN, :dim_out].set(params["w3"]).astype(dtype)
    b3 = jnp.zeros((1, OUT_PAD), jnp.float32).at[0, :dim_out].set(params["b3"])

    return w1, b1, w2, b2, w3, b3


# ----------------------------------------------------------------------------- wrapper
@functools.partial(jax.jit, static_argnames=("block_b", "out_dtype"))
def policy_forward_padded(x, w1, b1, w2, b2, w3, b3, *,
                          block_b=1024, out_dtype=jnp.bfloat16):
    """x: (B, dim_in) f32.  Returns the lane-padded (B, OUT_PAD) activations
    (real outputs in cols [:dim_out]); consumers that can read the padded layout
    avoid any post-slice entirely."""
    B, dim_in = x.shape

    # Batch tile: multiple of 128 (>= bf16 (16,128) packing), as large as block_b.
    tb = min(block_b, _round_up(B, 128))
    nb = _cdiv(B, tb)
    # v7x megacore: prefer an even number of grid steps so the "parallel" axis
    # splits across both TensorCores (no-op on single-TC v5e/v6e).
    if nb > 1 and nb % 2 == 1:
        tb_even = _round_up(_cdiv(B, nb + 1), 128)
        if tb_even >= 128:
            tb = tb_even
            nb = _cdiv(B, tb)

    flops = 2 * B * (dim_in * HIDDEN_PAD + HIDDEN_PAD * HIDDEN_PAD
                     + HIDDEN_PAD * OUT_PAD)
    bytes_accessed = (
        x.size * x.dtype.itemsize
        + sum(a.size * a.dtype.itemsize for a in (w1, b1, w2, b2, w3, b3))
        + B * OUT_PAD * jnp.dtype(out_dtype).itemsize)

    return pl.pallas_call(
        policy_kernel,
        out_shape=jax.ShapeDtypeStruct((B, OUT_PAD), out_dtype),
        grid_spec=pltpu.PrefetchScalarGridSpec(
            num_scalar_prefetch=0,
            grid=(nb,),
            in_specs=[
                pl.BlockSpec((tb, dim_in), lambda i: (i, 0)),           # x tile
                pl.BlockSpec((dim_in, HIDDEN_PAD), lambda i: (0, 0)),    # w1 (resident)
                pl.BlockSpec((1, HIDDEN_PAD), lambda i: (0, 0)),         # b1
                pl.BlockSpec((HIDDEN_PAD, HIDDEN_PAD), lambda i: (0, 0)),  # w2
                pl.BlockSpec((1, HIDDEN_PAD), lambda i: (0, 0)),         # b2
                pl.BlockSpec((HIDDEN_PAD, OUT_PAD), lambda i: (0, 0)),   # w3
                pl.BlockSpec((1, OUT_PAD), lambda i: (0, 0)),            # b3
            ],
            out_specs=pl.BlockSpec((tb, OUT_PAD), lambda i: (i, 0)),
        ),
        compiler_params=pltpu.CompilerParams(
            dimension_semantics=("parallel",),
        ),
        cost_estimate=pl.CostEstimate(
            flops=flops, transcendentals=0, bytes_accessed=bytes_accessed),
    )(x, w1, b1, w2, b2, w3, b3)


def policy_forward(x, packed, *, dim_out, block_b=1024, out_dtype=jnp.bfloat16):
    """Torch-shaped convenience wrapper: returns (B, dim_out)."""
    out_pad = policy_forward_padded(x, *packed, block_b=block_b, out_dtype=out_dtype)
    return out_pad[:, :dim_out]


# -------------------------------------------------------------------------- references
def policy_ref(x, params):
    """Pure-JAX f32 reference of the PyTorch forward."""
    h = jnp.maximum(x @ params["w1"] + params["b1"], 0.0)
    h = jnp.maximum(h @ params["w2"] + params["b2"], 0.0)
    return h @ params["w3"] + params["b3"]


def policy_ref_packed(x, w1, b1, w2, b2, w3, b3, out_dtype=jnp.bfloat16):
    """Reference using the same packed bf16 operands / f32 accumulation as the kernel."""
    xb = x.astype(w1.dtype)
    h1 = jnp.maximum(jnp.dot(xb, w1, preferred_element_type=jnp.float32) + b1, 0.0)
    h2 = jnp.maximum(jnp.dot(h1.astype(w2.dtype), w2,
                             preferred_element_type=jnp.float32) + b2, 0.0)
    out = jnp.dot(h2.astype(w3.dtype), w3, preferred_element_type=jnp.float32) + b3
    return out.astype(out_dtype)


# ------------------------------------------------------------------------------- main
if __name__ == "__main__":
    # BipedalWalker-v3: observation dim 24, action dim 4. A batch of 200 stacked env
    # rows fits in a single 256-row tile (nb=1), exercising the edge-block path.
    batch, dim_in, dim_out = 200, 24, 4

    key = jax.random.PRNGKey(0)
    k_params, k_x = jax.random.split(key)
    params = init_policy_params(k_params, dim_in, dim_out)
    x = jax.random.normal(k_x, (batch, dim_in), jnp.float32)

    packed = pack_policy_params(params, dim_in, dim_out)

    out_pad = policy_forward_padded(x, *packed)
    out_pad = jax.block_until_ready(out_pad)
    assert out_pad.shape == (batch, OUT_PAD), out_pad.shape

    out = jnp.asarray(out_pad[:, :dim_out], jnp.float32)
    assert out.shape == (batch, dim_out), out.shape

    # Exact-math check: same bf16 operands / f32 accumulation / bf16 store.
    ref_q = jnp.asarray(policy_ref_packed(x, *packed)[:, :dim_out], jnp.float32)
    assert jnp.allclose(out, ref_q, atol=2e-2, rtol=2e-2), "mismatch vs packed reference"

    # Sanity check against the full-f32 torch-equivalent forward (loose tol for bf16).
    ref = policy_ref(x, params)
    assert jnp.max(jnp.abs(out - ref)) < 0.15, "drift vs f32 reference too large"

    print("KERNEL_OK")
</pallas_src>

<mosaic_0001>
module attributes {stable_mosaic.version = 11 : i64} {
  func.func @policy_kernel(%arg0: i32, %arg1: memref<256x24xf32, #tpu.memory_space<vmem>>, %arg2: memref<24x256xbf16, #tpu.memory_space<vmem>>, %arg3: memref<1x256xf32, #tpu.memory_space<vmem>>, %arg4: memref<256x256xbf16, #tpu.memory_space<vmem>>, %arg5: memref<1x256xf32, #tpu.memory_space<vmem>>, %arg6: memref<256x128xbf16, #tpu.memory_space<vmem>>, %arg7: memref<1x128xf32, #tpu.memory_space<vmem>>, %arg8: memref<256x128xbf16, #tpu.memory_space<vmem>>) attributes {dimension_semantics = [#tpu.dimension_semantics<parallel>], iteration_bounds = array<i64: 1>, scalar_prefetch = 0 : i64, scratch_operands = 0 : i64, tpu.core_type = #tpu.core_type<tc>, window_params = [{transform_indices = @transform_0, window_bounds = array<i64: 256, 24>}, {pipeline_mode = #tpu.pipeline_mode<synchronous>, transform_indices = @transform_1, window_bounds = array<i64: 24, 256>}, {pipeline_mode = #tpu.pipeline_mode<synchronous>, transform_indices = @transform_2, window_bounds = array<i64: 1, 256>}, {pipeline_mode = #tpu.pipeline_mode<synchronous>, transform_indices = @transform_3, window_bounds = array<i64: 256, 256>}, {pipeline_mode = #tpu.pipeline_mode<synchronous>, transform_indices = @transform_4, window_bounds = array<i64: 1, 256>}, {pipeline_mode = #tpu.pipeline_mode<synchronous>, transform_indices = @transform_5, window_bounds = array<i64: 256, 128>}, {pipeline_mode = #tpu.pipeline_mode<synchronous>, transform_indices = @transform_6, window_bounds = array<i64: 1, 128>}, {transform_indices = @transform_7, window_bounds = array<i64: 256, 128>}]} {
    %c0 = arith.constant 0 : index
    %c0_0 = arith.constant 0 : index
    %0 = vector.load %arg1[%c0, %c0_0] : memref<256x24xf32, #tpu.memory_space<vmem>>, vector<256x24xf32>
    %1 = arith.truncf %0 : vector<256x24xf32> to vector<256x24xbf16>
    %c0_1 = arith.constant 0 : index
    %c0_2 = arith.constant 0 : index
    %2 = vector.load %arg2[%c0_1, %c0_2] : memref<24x256xbf16, #tpu.memory_space<vmem>>, vector<24x256xbf16>
    %cst = arith.constant dense<0.000000e+00> : vector<256x256xf32>
    %3 = tpu.matmul %1, %2, %cst {dimension_numbers = #tpu.dot_dimension_numbers<[1], [0], [0], [1], [0, 0, 1, 1], [], []>} : vector<256x24xbf16>, vector<24x256xbf16>, vector<256x256xf32> -> vector<256x256xf32>
    %c0_3 = arith.constant 0 : index
    %c0_4 = arith.constant 0 : index
    %4 = vector.load %arg3[%c0_3, %c0_4] : memref<1x256xf32, #tpu.memory_space<vmem>>, vector<1x256xf32>
    %5 = vector.broadcast %4 : vector<1x256xf32> to vector<256x256xf32>
    %6 = arith.addf %3, %5 : vector<256x256xf32>
    %cst_5 = arith.constant 0.000000e+00 : f32
    %7 = vector.broadcast %cst_5 : f32 to vector<256x256xf32>
    %8 = arith.maximumf %6, %7 : vector<256x256xf32>
    %9 = arith.truncf %8 : vector<256x256xf32> to vector<256x256xbf16>
    %c0_6 = arith.constant 0 : index
    %c0_7 = arith.constant 0 : index
    %10 = vector.load %arg4[%c0_6, %c0_7] : memref<256x256xbf16, #tpu.memory_space<vmem>>, vector<256x256xbf16>
    %cst_8 = arith.constant dense<0.000000e+00> : vector<256x256xf32>
    %11 = tpu.matmul %9, %10, %cst_8 {dimension_numbers = #tpu.dot_dimension_numbers<[1], [0], [0], [1], [0, 0, 1, 1], [], []>} : vector<256x256xbf16>, vector<256x256xbf16>, vector<256x256xf32> -> vector<256x256xf32>
    %c0_9 = arith.constant 0 : index
    %c0_10 = arith.constant 0 : index
    %12 = vector.load %arg5[%c0_9, %c0_10] : memref<1x256xf32, #tpu.memory_space<vmem>>, vector<1x256xf32>
    %13 = vector.broadcast %12 : vector<1x256xf32> to vector<256x256xf32>
    %14 = arith.addf %11, %13 : vector<256x256xf32>
    %cst_11 = arith.constant 0.000000e+00 : f32
    %15 = vector.broadcast %cst_11 : f32 to vector<256x256xf32>
    %16 = arith.maximumf %14, %15 : vector<256x256xf32>
    %17 = arith.truncf %16 : vector<256x256xf32> to vector<256x256xbf16>
    %c0_12 = arith.constant 0 : index
    %c0_13 = arith.constant 0 : index
    %18 = vector.load %arg6[%c0_12, %c0_13] : memref<256x128xbf16, #tpu.memory_space<vmem>>, vector<256x128xbf16>
    %cst_14 = arith.constant dense<0.000000e+00> : vector<256x128xf32>
    %19 = tpu.matmul %17, %18, %cst_14 {dimension_numbers = #tpu.dot_dimension_numbers<[1], [0], [0], [1], [0, 0, 1, 1], [], []>} : vector<256x256xbf16>, vector<256x128xbf16>, vector<256x128xf32> -> vector<256x128xf32>
    %c0_15 = arith.constant 0 : index
    %c0_16 = arith.constant 0 : index
    %20 = vector.load %arg7[%c0_15, %c0_16] : memref<1x128xf32, #tpu.memory_space<vmem>>, vector<1x128xf32>
    %21 = vector.broadcast %20 : vector<1x128xf32> to vector<256x128xf32>
    %22 = arith.addf %19, %21 : vector<256x128xf32>
    %23 = arith.truncf %22 : vector<256x128xf32> to vector<256x128xbf16>
    %c0_17 = arith.constant 0 : index
    %c0_18 = arith.constant 0 : index
    %24 = vector.load %arg8[%c0_17, %c0_18] : memref<256x128xbf16, #tpu.memory_space<vmem>>, vector<256x128xbf16>
    tpu.vector_store %arg8[%c0_17, %c0_18], %23 {strides = array<i32>} : memref<256x128xbf16, #tpu.memory_space<vmem>>, vector<256x128xbf16>,
    return
  }
  func.func @transform_0(%arg0: i32) -> (i32, i32) {
    %c0_i32 = arith.constant 0 : i32
    %c0_i32_0 = arith.constant 0 : i32
    return %arg0, %c0_i32 : i32, i32
  }
  func.func @transform_1(%arg0: i32) -> (i32, i32) {
    %c0_i32 = arith.constant 0 : i32
    %c0_i32_0 = arith.constant 0 : i32
    %c0_i32_1 = arith.constant 0 : i32
    return %c0_i32, %c0_i32_0 : i32, i32
  }
  func.func @transform_2(%arg0: i32) -> (i32, i32) {
    %c0_i32 = arith.constant 0 : i32
    %c0_i32_0 = arith.constant 0 : i32
    %c0_i32_1 = arith.constant 0 : i32
    return %c0_i32, %c0_i32_0 : i32, i32
  }
  func.func @transform_3(%arg0: i32) -> (i32, i32) {
    %c0_i32 = arith.constant 0 : i32
    %c0_i32_0 = arith.constant 0 : i32
    %c0_i32_1 = arith.constant 0 : i32
    return %c0_i32, %c0_i32_0 : i32, i32
  }
  func.func @transform_4(%arg0: i32) -> (i32, i32) {
    %c0_i32 = arith.constant 0 : i32
    %c0_i32_0 = arith.constant 0 : i32
    %c0_i32_1 = arith.constant 0 : i32
    return %c0_i32, %c0_i32_0 : i32, i32
  }
  func.func @transform_5(%arg0: i32) -> (i32, i32) {
    %c0_i32 = arith.constant 0 : i32
    %c0_i32_0 = arith.constant 0 : i32
    %c0_i32_1 = arith.constant 0 : i32
    return %c0_i32, %c0_i32_0 : i32, i32
  }
  func.func @transform_6(%arg0: i32) -> (i32, i32) {
    %c0_i32 = arith.constant 0 : i32
    %c0_i32_0 = arith.constant 0 : i32
    %c0_i32_1 = arith.constant 0 : i32
    return %c0_i32, %c0_i32_0 : i32, i32
  }
  func.func @transform_7(%arg0: i32) -> (i32, i32) {
    %c0_i32 = arith.constant 0 : i32
    %c0_i32_0 = arith.constant 0 : i32
    return %arg0, %c0_i32 : i32, i32
  }
}

</mosaic_0001>

<bundles_post_ra>
// kernel: policy_forward_padded.1
= control target key start
LH: loop header
LB: loop body
LE: loop exit
PB: predicated region body
PF: predicated region fallthrough
CT: control target
= control target key end

     0   :  { %12 = vsyncpa [#allocation3], 0  ;;  %s2481_s0 = inlined_call_operand.vmem [shape: f32[200,24], index: 0, kind: input, shape index: {}]   ;;  %s2482_s1 = inlined_call_operand.hbm [shape: bf16[24,256], index: 1, kind: input, shape index: {}]   ;;  %s2483_s2 = inlined_call_operand.vmem [shape: f32[1,256], index: 2, kind: input, shape index: {}]   ;;  %s2484_s3 = inlined_call_operand.vmem [shape: bf16[256,256], index: 3, kind: input, shape index: {}]   ;;  %s2485_s4 = inlined_call_operand.vmem [shape: f32[1,256], index: 4, kind: input, shape index: {}]   ;;  %s2486_s5 = inlined_call_operand.hbm [shape: bf16[256,128], index: 5, kind: input, shape index: {}]   ;;  %s2487_s6 = inlined_call_operand.vmem [shape: f32[1,128], index: 6, kind: input, shape index: {}]   ;;  %s2488_s7 = inlined_call_operand.hbm [shape: bf16[200,128], index: 7, kind: output, shape index: {}]  }
   0x1   :  { %13 = vsyncpa [#allocation6], 0 }
   0x2   :  { %14 = vsyncpa [#allocation4], 0  ;;  %s1940_s24 = smov [#allocation2]   ;;  %s1868_s28 = scalar_lea.hbm %s2482_s1, 384 }
   0x3   :  { %s22_s25 = sshll.u32 %s1940_s24, 4  ;;  %p1869_p0 = scmp.ne.s32.totalorder %s2482_s1, %s1868_s28  ;;  %s23_s25 = int_to_ptr.vmem [resolvable:$true] %s22_s25 }
   0x4   :  { %p1872_p1 = scmp.lt.u32.totalorder %s1868_s28, %s2482_s1 }
   0x6   :  { %p1874_p2 = pnand %p1872_p1, %p1869_p0 }
   0x8   :  { %1877 = shalt.err (!%p1874_p2)
}
   0x9   :  { %s1878_s10 = scalar_lea.vmem %s23_s25, 384  ;;  %p1883_p4 = scmp.lt.s32.totalorder %s23_s25, %s23_s25 }
   0xa   :  { %p1879_p3 = scmp.ne.s32.totalorder %s23_s25, %s1878_s10  ;;  %p1884_p5 = scmp.lt.s32.totalorder %s1878_s10, %s1878_s10 }
   0xc   :  { %p1885_p6 = por %p1884_p5, %p1883_p4 }
   0xe   :  { %p1886_p7 = pnand %p1885_p6, %p1879_p3 }
  0x10   :  { %1889 = shalt.err (!%p1886_p7)
}
  0x11   :  { %s1941_s11 = smov 128   ;;  %s1942_s12 = smov 8  }
  0x12   :  { %28 = dma.hbm_to_vmem [thread:$0]  %s2482_s1, 384, %s23_s25, [#allocation3], %s1941_s11, %s1941_s11, %s1942_s12  }
  0x13   :  { %s1943_s15 = smov [#allocation5]   ;;  %s1890_s19 = scalar_lea.hbm %s2486_s5, 2048 }
  0x14   :  { %s40_s16 = sshll.u32 %s1943_s15, 4  ;;  %p1891_p8 = scmp.ne.s32.totalorder %s2486_s5, %s1890_s19  ;;  %s41_s16 = int_to_ptr.vmem [resolvable:$true] %s40_s16 }
  0x15   :  { %p1894_p9 = scmp.lt.u32.totalorder %s1890_s19, %s2486_s5 }
  0x17   :  { %p1896_p10 = pnand %p1894_p9, %p1891_p8 }
  0x19   :  { %1899 = shalt.err (!%p1896_p10)
}
  0x1a   :  { %s1900_s24 = scalar_lea.vmem %s41_s16, 2048  ;;  %p1905_p12 = scmp.lt.s32.totalorder %s41_s16, %s41_s16 }
  0x1b   :  { %p1901_p11 = scmp.ne.s32.totalorder %s41_s16, %s1900_s24  ;;  %p1906_p13 = scmp.lt.s32.totalorder %s1900_s24, %s1900_s24 }
  0x1d   :  { %p1907_p0 = por %p1906_p13, %p1905_p12 }
  0x1f   :  { %p1908_p1 = pnand %p1907_p0, %p1901_p11 }
  0x21   :  { %1911 = shalt.err (!%p1908_p1)
}
  0x22   :  { %s1944_s1 = smov 64   ;;  %s1945_s25 = smov 4  }
  0x23   :  { %46 = dma.hbm_to_vmem [thread:$0]  %s2486_s5, 2048, %s41_s16, [#allocation6], %s1944_s1, %s1944_s1, %s1945_s25  }
  0x24   :  { %1934 = dma.done.wait [#allocation3], 384  }
  0x25   :  { %1935 = vsyncadd [#allocation3], 4294966912 }
  0x26   :  { %1936 = dma.done.wait [#allocation6], 2048  }
  0x27   :  { %1937 = vsyncadd [#allocation6], 4294965248  ;;  %v1946_v0 = vmov 0   ;;  %v1799_v1 = vld [vmem:[#allocation2 + $0x4] ss:$8 sps:$4 sm:$0xff]   ;;  %v106_v3 = vld [vmem:[#allocation2 + $0x10] sm:$0xff] }
  0x28   :  { %222 = vmatprep.mubr.bf16.mxu0 %v1946_v0  ;;  %302 = vmatprep.mubr.bf16.mxu1 %v1946_v0  ;;  %v1801_v2 = vld [vmem:[#allocation2] ss:$8 sps:$4 sm:$0xff]   ;;  %vm183_vm0 = vcmask 1043456   ;;  %v1449_v4 = vcombine.high %v106_v3, %v106_v3  ;;  %v1448_v5 = vcombine.low %v106_v3, %v106_v3  ;;  %vm134_vm1 = vcmask 195584   ;;  %v58_v13 = vld [vmem:[%s2481_s0 + $0x10] sm:$0xff]  ;;  %v59_v14 = vld [vmem:[%s2481_s0 + $0x18] sm:$0xff] }
  0x29   :  { %190 = vmatprep.subr.bf16.mxu0 %v1799_v1  ;;  %1787 = vmatprep.subr.bf16.mxu1 %v1799_v1  ;;  %v56_v6 = vld [vmem:[%s2481_s0] sm:$0xff]  ;;  %v57_v7 = vld [vmem:[%s2481_s0 + $0x8] sm:$0xff]  ;;  %v74_v15 = vld [vmem:[%s2481_s0 + $0x90] sm:$0xff]  ;;  %v89_v19 = vpack.c.bf16 %v59_v14, %v58_v13 }
  0x2a   :  { %191 = vmatpush1.bf16.msra.mxu0 %v1801_v2  ;;  %1789 = vmatpush1.bf16.msra.mxu1 %v1801_v2  ;;  %v185_v8 = vsel %vm183_vm0, %v1448_v5, 0  ;;  %v88_v9 = vpack.c.bf16 %v57_v7, %v56_v6  ;;  %v72_v10 = vld [vmem:[%s2481_s0 + $0x80] sm:$0xff]  ;;  %v73_v11 = vld [vmem:[%s2481_s0 + $0x88] sm:$0xff]  ;;  %v75_v16 = vld [vmem:[%s2481_s0 + $0x98] sm:$0xff] }
  0x2b   :  { %1450 = vmatprep.subr.msk.bf16.mxu0 %vm183_vm0, %v1449_v4  ;;  %1788 = vmatprep.subr.msk.bf16.mxu1 %vm183_vm0, %v1449_v4  ;;  %v96_v12 = vpack.c.bf16 %v73_v11, %v72_v10  ;;  %v1804_v17 = vld [vmem:[%s2484_s3] ss:$8 sps:$4 sm:$0xff]   ;;  %v1806_v18 = vld [vmem:[%s2484_s3 + $0x4] ss:$8 sps:$4 sm:$0xff]   ;;  %v97_v20 = vpack.c.bf16 %v75_v16, %v74_v15  ;;  %v1809_v21 = vld [vmem:[%s2484_s3 + $0x14] ss:$8 sps:$4 sm:$0xff]  }
  0x2c   :  { %v1807_v22 = vld [vmem:[%s2484_s3 + $0x10] ss:$8 sps:$4 sm:$0xff]   ;;  %v60_v23 = vld [vmem:[%s2481_s0 + $0x20] sm:$0xff]  ;;  %v61_v25 = vld [vmem:[%s2481_s0 + $0x28] sm:$0xff] }
  0x2d   :  { %v1812_v24 = vld [vmem:[%s2484_s3 + $0x24] ss:$8 sps:$4 sm:$0xff]   ;;  %v1810_v28 = vld [vmem:[%s2484_s3 + $0x20] ss:$8 sps:$4 sm:$0xff]   ;;  %v1815_v29 = vld [vmem:[%s2484_s3 + $0x34] ss:$8 sps:$4 sm:$0xff]   ;;  %v90_v30 = vpack.c.bf16 %v61_v25, %v60_v23  ;;  %v109_v23 = vlaneseq }
  0x2e   :  { %193 = vmatpush1.bf16.msra.mxu0 %v185_v8  ;;  %1790 = vmatpush1.bf16.msra.mxu1 %v185_v8  ;;  %v76_v26 = vld [vmem:[%s2481_s0 + $0xa0] sm:$0xff]  ;;  %v77_v27 = vld [vmem:[%s2481_s0 + $0xa8] sm:$0xff]  ;;  %v1813_v32 = vld [vmem:[%s2484_s3 + $0x30] ss:$8 sps:$4 sm:$0xff]  }
  0x2f   :  { %683 = vmatprep.subr.bf16.mxu1 %v1806_v18  ;;  %v98_v31 = vpack.c.bf16 %v77_v27, %v76_v26  ;;  %v62_v33 = vld [vmem:[%s2481_s0 + $0x30] sm:$0xff]  ;;  %v1818_v34 = vld [vmem:[%s2484_s3 + $0x44] ss:$8 sps:$4 sm:$0xff]   ;;  %v63_v35 = vld [vmem:[%s2481_s0 + $0x38] sm:$0xff] }
  0x30   :  { %v78_v36 = vld [vmem:[%s2481_s0 + $0xb0] sm:$0xff]  ;;  %v79_v37 = vld [vmem:[%s2481_s0 + $0xb8] sm:$0xff]  ;;  %v1816_v38 = vld [vmem:[%s2484_s3 + $0x40] ss:$8 sps:$4 sm:$0xff]   ;;  %v91_v40 = vpack.c.bf16 %v63_v35, %v62_v33 }
  0x31   :  { %1451 = vmatmul.mubr.msk.bf16.vlgmr.msra.gmra.mrb[0].mxu0 %vm134_vm1, %v88_v9  ;;  %1459 = vmatmul.mubr.msk.bf16.vlgmr.msra.gmra.mrb[0].mxu1 %vm134_vm1, %v96_v12  ;;  %v1821_v39 = vld [vmem:[%s2484_s3 + $0x54] ss:$8 sps:$4 sm:$0xff]   ;;  %v99_v41 = vpack.c.bf16 %v79_v37, %v78_v36  ;;  %v1819_v42 = vld [vmem:[%s2484_s3 + $0x50] ss:$8 sps:$4 sm:$0xff]   ;;  %v1824_v43 = vld [vmem:[%s2484_s3 + $0x64] ss:$8 sps:$4 sm:$0xff]  }
  0x32   :  { %232 = vmatprep.mubr.bf16.mxu0 %v1946_v0  ;;  %312 = vmatprep.mubr.bf16.mxu1 %v1946_v0  ;;  %v64_v44 = vld [vmem:[%s2481_s0 + $0x40] sm:$0xff]  ;;  %v65_v45 = vld [vmem:[%s2481_s0 + $0x48] sm:$0xff]  ;;  %v1827_v49 = vld [vmem:[%s2484_s3 + $0x74] ss:$8 sps:$4 sm:$0xff]  }
  0x33   :  { %684 = vmatpush1.bf16.msra.mxu1 %v1804_v17  ;;  %v80_v46 = vld [vmem:[%s2481_s0 + $0xc0] sm:$0xff]  ;;  %v81_v47 = vld [vmem:[%s2481_s0 + $0xc8] sm:$0xff]  ;;  %v92_v50 = vpack.c.bf16 %v65_v45, %v64_v44  ;;  %v1825_v52 = vld [vmem:[%s2484_s3 + $0x70] ss:$8 sps:$4 sm:$0xff]  }
  0x34   :  { %685 = vmatprep.subr.bf16.mxu1 %v1809_v21  ;;  %v1822_v48 = vld [vmem:[%s2484_s3 + $0x60] ss:$8 sps:$4 sm:$0xff]   ;;  %v100_v51 = vpack.c.bf16 %v81_v47, %v80_v46  ;;  %v1830_v53 = vld [vmem:[%s2484_s3 + $0x84] ss:$8 sps:$4 sm:$0xff]   ;;  %v66_v54 = vld [vmem:[%s2481_s0 + $0x50] sm:$0xff] }
  0x35   :  { %v67_v55 = vld [vmem:[%s2481_s0 + $0x58] sm:$0xff]  ;;  %v82_v56 = vld [vmem:[%s2481_s0 + $0xd0] sm:$0xff]  ;;  %v1828_v58 = vld [vmem:[%s2484_s3 + $0x80] ss:$8 sps:$4 sm:$0xff]  }
  0x36   :  { %v83_v57 = vld [vmem:[%s2481_s0 + $0xd8] sm:$0xff]  ;;  %v93_v60 = vpack.c.bf16 %v67_v55, %v66_v54  ;;  %v1836_v63 = vld [vmem:[%s2484_s3 + $0xa4] ss:$8 sps:$4 sm:$0xff]   ;;  %v1834_v5 = vld [vmem:[%s2484_s3 + $0xa0] ss:$8 sps:$4 sm:$0xff]  }
  0x37   :  { %686 = vmatpush1.bf16.msra.mxu1 %v1807_v22  ;;  %v1833_v59 = vld [vmem:[%s2484_s3 + $0x94] ss:$8 sps:$4 sm:$0xff]   ;;  %v101_v61 = vpack.c.bf16 %v83_v57, %v82_v56  ;;  %v1831_v62 = vld [vmem:[%s2484_s3 + $0x90] ss:$8 sps:$4 sm:$0xff]   ;;  %v68_v1 = vld [vmem:[%s2481_s0 + $0x60] sm:$0xff] }
  0x38   :  { %687 = vmatprep.subr.bf16.mxu1 %v1812_v24  ;;  %v69_v2 = vld [vmem:[%s2481_s0 + $0x68] sm:$0xff]  ;;  %v84_v3 = vld [vmem:[%s2481_s0 + $0xe0] sm:$0xff]  ;;  %v1839_v6 = vld [vmem:[%s2484_s3 + $0xb4] ss:$8 sps:$4 sm:$0xff]   ;;  %v2239_v24 = vshrl.u32 %v109_v23, 7 }
  0x39   :  { %1452 = vmatmul.mubr.msk.bf16.gmra.mrb[4].mxu0 %vm134_vm1, %v89_v19  ;;  %1460 = vmatmul.mubr.msk.bf16.gmra.mrb[4].mxu1 %vm134_vm1, %v97_v20  ;;  %v85_v4 = vld [vmem:[%s2481_s0 + $0xe8] sm:$0xff]  ;;  %v94_v7 = vpack.c.bf16 %v69_v2, %v68_v1  ;;  %v1837_v9 = vld [vmem:[%s2484_s3 + $0xb0] ss:$8 sps:$4 sm:$0xff]   ;;  %v1845_v16 = vld [vmem:[%s2484_s3 + $0xd4] ss:$8 sps:$4 sm:$0xff]  }
  0x3a   :  { %242 = vmatprep.mubr.bf16.mxu0 %v1946_v0  ;;  %322 = vmatprep.mubr.bf16.mxu1 %v1946_v0  ;;  %v102_v8 = vpack.c.bf16 %v85_v4, %v84_v3  ;;  %v1842_v10 = vld [vmem:[%s2484_s3 + $0xc4] ss:$8 sps:$4 sm:$0xff]   ;;  %v70_v11 = vld [vmem:[%s2481_s0 + $0x70] sm:$0xff]  ;;  %v71_v12 = vld [vmem:[%s2481_s0 + $0x78] sm:$0xff]  ;;  %v111_v25 = vsub.s32 0, %v2239_v24  ;;  %v115_v27 = vsub.s32 1, %v2239_v24 }
  0x3b   :  { %688 = vmatpush1.bf16.msra.mxu1 %v1810_v28  ;;  %v86_v13 = vld [vmem:[%s2481_s0 + $0xf0] sm:$0xff]  ;;  %v87_v14 = vld [vmem:[%s2481_s0 + $0xf8] sm:$0xff]  ;;  %v1840_v15 = vld [vmem:[%s2484_s3 + $0xc0] ss:$8 sps:$4 sm:$0xff]   ;;  %v95_v17 = vpack.c.bf16 %v71_v12, %v70_v11 }
  0x3c   :  { %689 = vmatprep.subr.bf16.mxu1 %v1815_v29  ;;  %v1843_v18 = vld [vmem:[%s2484_s3 + $0xd0] ss:$8 sps:$4 sm:$0xff]   ;;  %v1848_v19 = vld [vmem:[%s2484_s3 + $0xe4] ss:$8 sps:$4 sm:$0xff]   ;;  %v1846_v20 = vld [vmem:[%s2484_s3 + $0xe0] ss:$8 sps:$4 sm:$0xff]  }
  0x3d   :  { %v1851_v21 = vld [vmem:[%s2484_s3 + $0xf4] ss:$8 sps:$4 sm:$0xff]   ;;  %v1849_v22 = vld [vmem:[%s2484_s3 + $0xf0] ss:$8 sps:$4 sm:$0xff]   ;;  %v107_v26 = vld [vmem:[%s2483_s2] sm:$0x3] }
  0x3e   :  { %v2248_v28 = vrot.slane %v107_v26, %v111_v25  ;;  %v2252_v29 = vrot.slane %v107_v26, %v115_v27  ;;  %v1852_v45 = vld [vmem:[#allocation5 + $0x40] sm:$0xff]   ;;  %v1855_v57 = vld [vmem:[#allocation5 + $0x8] sm:$0xff]  }
  0x3f   :  { %690 = vmatpush1.bf16.msra.mxu1 %v1813_v32  ;;  %v1853_v46 = vld [vmem:[#allocation5] sm:$0xff]   ;;  %1675 = vmatprep.subr.bf16.mxu0 %v1852_v45 }
  0x40   :  { %691 = vmatprep.subr.bf16.mxu1 %v1818_v34  ;;  %1676 = vmatpush3.bf16.msra.mxu0 %v1853_v46  ;;  %v1861_v46 = vld [vmem:[#allocation5 + $0x20] sm:$0xff]  }
  0x41   :  { %1453 = vmatmul.mubr.msk.bf16.gmra.mrb[8].mxu0 %vm134_vm1, %v90_v30  ;;  %1461 = vmatmul.mubr.msk.bf16.gmra.mrb[8].mxu1 %vm134_vm1, %v98_v31 }
  0x42   :  { %252 = vmatprep.mubr.bf16.mxu0 %v1946_v0  ;;  %332 = vmatprep.mubr.bf16.mxu1 %v1946_v0 }
  0x43   :  { %692 = vmatpush1.bf16.msra.mxu1 %v1816_v38 }
  0x44   :  { %693 = vmatprep.subr.bf16.mxu1 %v1821_v39 }
  0x47   :  { %694 = vmatpush1.bf16.msra.mxu1 %v1819_v42 }
  0x48   :  { %695 = vmatprep.subr.bf16.mxu1 %v1824_v43 }
  0x49   :  { %1454 = vmatmul.mubr.msk.bf16.gmra.mrb[12].mxu0 %vm134_vm1, %v91_v40  ;;  %1462 = vmatmul.mubr.msk.bf16.gmra.mrb[12].mxu1 %vm134_vm1, %v99_v41 }
  0x4a   :  { %262 = vmatprep.mubr.bf16.mxu0 %v1946_v0  ;;  %342 = vmatprep.mubr.bf16.mxu1 %v1946_v0 }
  0x4b   :  { %696 = vmatpush1.bf16.msra.mxu1 %v1822_v48 }
  0x4c   :  { %697 = vmatprep.subr.bf16.mxu1 %v1827_v49 }
  0x4f   :  { %698 = vmatpush1.bf16.msra.mxu1 %v1825_v52 }
  0x50   :  { %699 = vmatprep.subr.bf16.mxu1 %v1830_v53 }
  0x51   :  { %1455 = vmatmul.mubr.msk.bf16.gmra.mrb[16].mxu0 %vm134_vm1, %v92_v50  ;;  %1463 = vmatmul.mubr.msk.bf16.gmra.mrb[16].mxu1 %vm134_vm1, %v100_v51  ;;  %v1854_v50 = vld [vmem:[#allocation5 + $0x48] sm:$0xff]  }
  0x52   :  { %272 = vmatprep.mubr.bf16.mxu0 %v1946_v0  ;;  %352 = vmatprep.mubr.bf16.mxu1 %v1946_v0 }
  0x53   :  { %700 = vmatpush1.bf16.msra.mxu1 %v1828_v58  ;;  %1677 = vmatprep.subr.bf16.mxu0 %v1854_v50 }
  0x54   :  { %701 = vmatprep.subr.bf16.mxu1 %v1833_v59  ;;  %1678 = vmatpush3.bf16.msra.mxu0 %v1855_v57 }
  0x57   :  { %702 = vmatpush1.bf16.msra.mxu1 %v1831_v62 }
  0x58   :  { %703 = vmatprep.subr.bf16.mxu1 %v1836_v63 }
  0x59   :  { %1456 = vmatmul.mubr.msk.bf16.gmra.mrb[20].mxu0 %vm134_vm1, %v93_v60  ;;  %1464 = vmatmul.mubr.msk.bf16.gmra.mrb[20].mxu1 %vm134_vm1, %v101_v61  ;;  %v1856_v60 = vld [vmem:[#allocation5 + $0x50] sm:$0xff]  }
  0x5a   :  { %282 = vmatprep.mubr.bf16.mxu0 %v1946_v0  ;;  %362 = vmatprep.mubr.bf16.mxu1 %v1946_v0 }
  0x5b   :  { %704 = vmatpush1.bf16.msra.mxu1 %v1834_v5  ;;  %1679 = vmatprep.subr.bf16.mxu0 %v1856_v60 }
  0x5c   :  { %705 = vmatprep.subr.bf16.mxu1 %v1839_v6 }
  0x5f   :  { %706 = vmatpush1.bf16.msra.mxu1 %v1837_v9 }
  0x60   :  { %707 = vmatprep.subr.bf16.mxu1 %v1842_v10  ;;  %v1857_v10 = vld [vmem:[#allocation5 + $0x10] sm:$0xff]  }
  0x61   :  { %1457 = vmatmul.mubr.msk.bf16.gmra.mrb[24].mxu0 %vm134_vm1, %v94_v7  ;;  %1465 = vmatmul.mubr.msk.bf16.gmra.mrb[24].mxu1 %vm134_vm1, %v102_v8 }
  0x62   :  { %292 = vmatprep.mubr.bf16.mxu0 %v1946_v0  ;;  %372 = vmatprep.mubr.bf16.mxu1 %v1946_v0  ;;  %v103_v0 = vpack.c.bf16 %v87_v14, %v86_v13 }
  0x63   :  { %708 = vmatpush1.bf16.msra.mxu1 %v1840_v15  ;;  %1680 = vmatpush3.bf16.msra.mxu0 %v1857_v10 }
  0x64   :  { %709 = vmatprep.subr.bf16.mxu1 %v1845_v16  ;;  %v1858_v16 = vld [vmem:[#allocation5 + $0x58] sm:$0xff]  }
  0x65   :  { %1681 = vmatprep.subr.bf16.mxu0 %v1858_v16 }
  0x67   :  { %710 = vmatpush1.bf16.msra.mxu1 %v1843_v18 }
  0x68   :  { %711 = vmatprep.subr.bf16.mxu1 %v1848_v19 }
  0x69   :  { %1458 = vmatmul.mubr.msk.bf16.gmra.mrb[28].mxu0 %vm134_vm1, %v95_v17  ;;  %1466 = vmatmul.mubr.msk.bf16.gmra.mrb[28].mxu1 %vm134_vm1, %v103_v0 }
  0x6b   :  { %712 = vmatpush1.bf16.msra.mxu1 %v1846_v20 }
  0x6c   :  { %713 = vmatprep.subr.bf16.mxu1 %v1851_v21 }
  0x6f   :  { %714 = vmatpush1.bf16.msra.mxu1 %v1849_v22 }
 0x104   :  { %v224_v30 = vpop.f32.mrb[0].mxu0  ;;  %v304_v31 = vpop.f32.mrb[0].mxu1 }
 0x105   :  { %v225_v32 = vadd.f32 %v224_v30, %v2248_v28  ;;  %v226_v33 = vpop.f32.mrb[1].mxu0  ;;  %v305_v34 = vadd.f32 %v304_v31, %v2248_v28  ;;  %v306_v35 = vpop.f32.mrb[1].mxu1  ;;  %v1859_v30 = vld [vmem:[#allocation5 + $0x18] sm:$0xff]  }
 0x106   :  { %v227_v36 = vadd.f32 %v226_v33, %v2252_v29  ;;  %v228_v37 = vpop.f32.mrb[2].mxu0  ;;  %v307_v38 = vadd.f32 %v306_v35, %v2252_v29  ;;  %v308_v39 = vpop.f32.mrb[2].mxu1  ;;  %v1860_v33 = vld [vmem:[#allocation5 + $0x60] sm:$0xff]   ;;  %1682 = vmatpush3.bf16.msra.mxu0 %v1859_v30 }
 0x107   :  { %v229_v40 = vadd.f32 %v228_v37, %v2248_v28  ;;  %v230_v41 = vpop.f32.mrb[3].mxu0  ;;  %v415_v42 = vmax.f32 %v305_v34, 0.0  ;;  %v309_v43 = vadd.f32 %v308_v39, %v2248_v28  ;;  %v310_v44 = vpop.f32.mrb[3].mxu1  ;;  %v383_v51 = vmax.f32 %v225_v32, 0.0  ;;  %1683 = vmatprep.subr.bf16.mxu0 %v1860_v33 }
 0x108   :  { %v231_v47 = vadd.f32 %v230_v41, %v2252_v29  ;;  %v416_v48 = vmax.f32 %v307_v38, 0.0  ;;  %v311_v49 = vadd.f32 %v310_v44, %v2252_v29  ;;  %v384_v54 = vmax.f32 %v227_v36, 0.0 }
 0x109   :  { %v385_v52 = vmax.f32 %v229_v40, 0.0  ;;  %v417_v53 = vmax.f32 %v309_v43, 0.0 }
 0x10a   :  { %v386_v55 = vmax.f32 %v231_v47, 0.0  ;;  %v418_v56 = vmax.f32 %v311_v49, 0.0  ;;  %1684 = vmatpush3.bf16.msra.mxu0 %v1861_v46 }
 0x10b   :  { %v447_v58 = vpack.c.bf16 %v385_v52, %v383_v51  ;;  %v2262_v59 = vpack.c.bf16 %v417_v53, %v415_v42  ;;  %v1862_v52 = vld [vmem:[#allocation5 + $0x68] sm:$0xff]  }
 0x10c   :  { %v448_v61 = vpack.c.bf16 %v386_v55, %v384_v54  ;;  %v234_v62 = vpop.f32.mrb[4].mxu0  ;;  %v2264_v63 = vpack.c.bf16 %v418_v56, %v416_v48  ;;  %v314_v1 = vpop.f32.mrb[4].mxu1  ;;  %1685 = vmatprep.subr.bf16.mxu0 %v1862_v52 }
 0x10d   :  { %v235_v2 = vadd.f32 %v234_v62, %v2248_v28  ;;  %v236_v3 = vpop.f32.mrb[5].mxu0  ;;  %v315_v4 = vadd.f32 %v314_v1, %v2248_v28  ;;  %v316_v5 = vpop.f32.mrb[5].mxu1  ;;  %v1863_v1 = vld [vmem:[#allocation5 + $0x28] sm:$0xff]  }
 0x10e   :  { %v237_v6 = vadd.f32 %v236_v3, %v2252_v29  ;;  %v238_v7 = vpop.f32.mrb[6].mxu0  ;;  %715 = vmatprep.mubr.bf16.mxu1 %v448_v61  ;;  %v317_v8 = vadd.f32 %v316_v5, %v2252_v29  ;;  %v318_v9 = vpop.f32.mrb[6].mxu1  ;;  %1686 = vmatpush3.bf16.msra.mxu0 %v1863_v1 }
 0x10f   :  { %v239_v11 = vadd.f32 %v238_v7, %v2248_v28  ;;  %v240_v12 = vpop.f32.mrb[7].mxu0  ;;  %716 = vmatmul.mubr.bf16.vlgmr.msra.gmra.mrb[32].mxu1 %v447_v58  ;;  %v419_v13 = vmax.f32 %v315_v4, 0.0  ;;  %v319_v14 = vadd.f32 %v318_v9, %v2248_v28  ;;  %v320_v15 = vpop.f32.mrb[7].mxu1  ;;  %v387_v19 = vmax.f32 %v235_v2, 0.0  ;;  %v1864_v4 = vld [vmem:[#allocation5 + $0x70] sm:$0xff]  }
 0x110   :  { %v241_v17 = vadd.f32 %v240_v12, %v2252_v29  ;;  %v420_v0 = vmax.f32 %v317_v8, 0.0  ;;  %v321_v18 = vadd.f32 %v320_v15, %v2252_v29  ;;  %v388_v22 = vmax.f32 %v237_v6, 0.0  ;;  %1687 = vmatprep.subr.bf16.mxu0 %v1864_v4 }
 0x111   :  { %v389_v20 = vmax.f32 %v239_v11, 0.0  ;;  %v421_v21 = vmax.f32 %v319_v14, 0.0 }
 0x112   :  { %v390_v23 = vmax.f32 %v241_v17, 0.0  ;;  %v422_v26 = vmax.f32 %v321_v18, 0.0  ;;  %v1865_v17 = vld [vmem:[#allocation5 + $0x30] sm:$0xff]  }
 0x113   :  { %v449_v31 = vpack.c.bf16 %v389_v20, %v387_v19  ;;  %v2274_v32 = vpack.c.bf16 %v421_v21, %v419_v13  ;;  %1688 = vmatpush3.bf16.msra.mxu0 %v1865_v17 }
 0x114   :  { %v450_v34 = vpack.c.bf16 %v390_v23, %v388_v22  ;;  %v244_v35 = vpop.f32.mrb[8].mxu0  ;;  %v2276_v36 = vpack.c.bf16 %v422_v26, %v420_v0  ;;  %v324_v37 = vpop.f32.mrb[8].mxu1 }
 0x115   :  { %v245_v38 = vadd.f32 %v244_v35, %v2248_v28  ;;  %v246_v39 = vpop.f32.mrb[9].mxu0  ;;  %v325_v40 = vadd.f32 %v324_v37, %v2248_v28  ;;  %v326_v41 = vpop.f32.mrb[9].mxu1 }
 0x116   :  { %v247_v42 = vadd.f32 %v246_v39, %v2252_v29  ;;  %v248_v43 = vpop.f32.mrb[10].mxu0  ;;  %725 = vmatprep.mubr.bf16.mxu1 %v450_v34  ;;  %v327_v44 = vadd.f32 %v326_v41, %v2252_v29  ;;  %v328_v45 = vpop.f32.mrb[10].mxu1 }
 0x117   :  { %v249_v47 = vadd.f32 %v248_v43, %v2248_v28  ;;  %v250_v48 = vpop.f32.mrb[11].mxu0  ;;  %726 = vmatmul.mubr.bf16.gmra.mrb[36].mxu1 %v449_v31  ;;  %v423_v49 = vmax.f32 %v325_v40, 0.0  ;;  %v329_v50 = vadd.f32 %v328_v45, %v2248_v28  ;;  %v330_v51 = vpop.f32.mrb[11].mxu1  ;;  %v391_v56 = vmax.f32 %v245_v38, 0.0 }
 0x118   :  { %v251_v53 = vadd.f32 %v250_v48, %v2252_v29  ;;  %v424_v54 = vmax.f32 %v327_v44, 0.0  ;;  %v331_v55 = vadd.f32 %v330_v51, %v2252_v29  ;;  %v392_v60 = vmax.f32 %v247_v42, 0.0 }
 0x119   :  { %v393_v57 = vmax.f32 %v249_v47, 0.0  ;;  %v425_v58 = vmax.f32 %v329_v50, 0.0 }
 0x11a   :  { %v394_v61 = vmax.f32 %v251_v53, 0.0  ;;  %v426_v62 = vmax.f32 %v331_v55, 0.0 }
 0x11b   :  { %v451_v2 = vpack.c.bf16 %v393_v57, %v391_v56  ;;  %v2286_v3 = vpack.c.bf16 %v425_v58, %v423_v49 }
 0x11c   :  { %v452_v5 = vpack.c.bf16 %v394_v61, %v392_v60  ;;  %v254_v6 = vpop.f32.mrb[12].mxu0  ;;  %v2288_v7 = vpack.c.bf16 %v426_v62, %v424_v54  ;;  %v334_v8 = vpop.f32.mrb[12].mxu1 }
 0x11d   :  { %v255_v9 = vadd.f32 %v254_v6, %v2248_v28  ;;  %v256_v10 = vpop.f32.mrb[13].mxu0  ;;  %v335_v11 = vadd.f32 %v334_v8, %v2248_v28  ;;  %v336_v12 = vpop.f32.mrb[13].mxu1 }
 0x11e   :  { %v257_v13 = vadd.f32 %v256_v10, %v2252_v29  ;;  %v258_v14 = vpop.f32.mrb[14].mxu0  ;;  %735 = vmatprep.mubr.bf16.mxu1 %v452_v5  ;;  %v337_v15 = vadd.f32 %v336_v12, %v2252_v29  ;;  %v338_v16 = vpop.f32.mrb[14].mxu1 }
 0x11f   :  { %v259_v0 = vadd.f32 %v258_v14, %v2248_v28  ;;  %v260_v18 = vpop.f32.mrb[15].mxu0  ;;  %736 = vmatmul.mubr.bf16.gmra.mrb[40].mxu1 %v451_v2  ;;  %v427_v19 = vmax.f32 %v335_v11, 0.0  ;;  %v339_v20 = vadd.f32 %v338_v16, %v2248_v28  ;;  %v340_v21 = vpop.f32.mrb[15].mxu1  ;;  %v395_v30 = vmax.f32 %v255_v9, 0.0 }
 0x120   :  { %v261_v22 = vadd.f32 %v260_v18, %v2252_v29  ;;  %v428_v23 = vmax.f32 %v337_v15, 0.0  ;;  %v341_v26 = vadd.f32 %v340_v21, %v2252_v29  ;;  %v396_v34 = vmax.f32 %v257_v13, 0.0 }
 0x121   :  { %v397_v31 = vmax.f32 %v259_v0, 0.0  ;;  %v429_v33 = vmax.f32 %v339_v20, 0.0 }
 0x122   :  { %v398_v35 = vmax.f32 %v261_v22, 0.0  ;;  %v430_v37 = vmax.f32 %v341_v26, 0.0 }
 0x123   :  { %v453_v38 = vpack.c.bf16 %v397_v31, %v395_v30  ;;  %v2298_v39 = vpack.c.bf16 %v429_v33, %v427_v19 }
 0x124   :  { %v454_v40 = vpack.c.bf16 %v398_v35, %v396_v34  ;;  %v264_v41 = vpop.f32.mrb[16].mxu0  ;;  %v2300_v42 = vpack.c.bf16 %v430_v37, %v428_v23  ;;  %v344_v43 = vpop.f32.mrb[16].mxu1 }
 0x125   :  { %v265_v44 = vadd.f32 %v264_v41, %v2248_v28  ;;  %v266_v45 = vpop.f32.mrb[17].mxu0  ;;  %v345_v46 = vadd.f32 %v344_v43, %v2248_v28  ;;  %v346_v47 = vpop.f32.mrb[17].mxu1 }
 0x126   :  { %v267_v48 = vadd.f32 %v266_v45, %v2252_v29  ;;  %v268_v49 = vpop.f32.mrb[18].mxu0  ;;  %745 = vmatprep.mubr.bf16.mxu1 %v454_v40  ;;  %v347_v50 = vadd.f32 %v346_v47, %v2252_v29  ;;  %v348_v51 = vpop.f32.mrb[18].mxu1 }
 0x127   :  { %v269_v52 = vadd.f32 %v268_v49, %v2248_v28  ;;  %v270_v53 = vpop.f32.mrb[19].mxu0  ;;  %746 = vmatmul.mubr.bf16.gmra.mrb[44].mxu1 %v453_v38  ;;  %v431_v54 = vmax.f32 %v345_v46, 0.0  ;;  %v349_v55 = vadd.f32 %v348_v51, %v2248_v28  ;;  %v350_v56 = vpop.f32.mrb[19].mxu1  ;;  %v399_v61 = vmax.f32 %v265_v44, 0.0 }
 0x128   :  { %v271_v57 = vadd.f32 %v270_v53, %v2252_v29  ;;  %v432_v58 = vmax.f32 %v347_v50, 0.0  ;;  %v351_v60 = vadd.f32 %v350_v56, %v2252_v29  ;;  %v400_v2 = vmax.f32 %v267_v48, 0.0 }
 0x129   :  { %v401_v62 = vmax.f32 %v269_v52, 0.0  ;;  %v433_v1 = vmax.f32 %v349_v55, 0.0 }
 0x12a   :  { %v402_v4 = vmax.f32 %v271_v57, 0.0  ;;  %v434_v5 = vmax.f32 %v351_v60, 0.0 }
 0x12b   :  { %v455_v6 = vpack.c.bf16 %v401_v62, %v399_v61  ;;  %v2310_v8 = vpack.c.bf16 %v433_v1, %v431_v54 }
 0x12c   :  { %v456_v9 = vpack.c.bf16 %v402_v4, %v400_v2  ;;  %v274_v10 = vpop.f32.mrb[20].mxu0  ;;  %v2312_v11 = vpack.c.bf16 %v434_v5, %v432_v58  ;;  %v354_v12 = vpop.f32.mrb[20].mxu1 }
 0x12d   :  { %v275_v13 = vadd.f32 %v274_v10, %v2248_v28  ;;  %v276_v14 = vpop.f32.mrb[21].mxu0  ;;  %v355_v15 = vadd.f32 %v354_v12, %v2248_v28  ;;  %v356_v16 = vpop.f32.mrb[21].mxu1 }
 0x12e   :  { %v277_v17 = vadd.f32 %v276_v14, %v2252_v29  ;;  %v278_v0 = vpop.f32.mrb[22].mxu0  ;;  %755 = vmatprep.mubr.bf16.mxu1 %v456_v9  ;;  %v357_v18 = vadd.f32 %v356_v16, %v2252_v29  ;;  %v358_v19 = vpop.f32.mrb[22].mxu1 }
 0x12f   :  { %v279_v20 = vadd.f32 %v278_v0, %v2248_v28  ;;  %v280_v21 = vpop.f32.mrb[23].mxu0  ;;  %756 = vmatmul.mubr.bf16.gmra.mrb[48].mxu1 %v455_v6  ;;  %v435_v22 = vmax.f32 %v355_v15, 0.0  ;;  %v359_v23 = vadd.f32 %v358_v19, %v2248_v28  ;;  %v360_v26 = vpop.f32.mrb[23].mxu1  ;;  %v403_v34 = vmax.f32 %v275_v13, 0.0 }
 0x130   :  { %v281_v30 = vadd.f32 %v280_v21, %v2252_v29  ;;  %v436_v31 = vmax.f32 %v357_v18, 0.0  ;;  %v361_v33 = vadd.f32 %v360_v26, %v2252_v29  ;;  %v404_v38 = vmax.f32 %v277_v17, 0.0 }
 0x131   :  { %v405_v35 = vmax.f32 %v279_v20, 0.0  ;;  %v437_v37 = vmax.f32 %v359_v23, 0.0 }
 0x132   :  { %v406_v40 = vmax.f32 %v281_v30, 0.0  ;;  %v438_v41 = vmax.f32 %v361_v33, 0.0 }
 0x133   :  { %v457_v43 = vpack.c.bf16 %v405_v35, %v403_v34  ;;  %v2322_v44 = vpack.c.bf16 %v437_v37, %v435_v22 }
 0x134   :  { %v458_v45 = vpack.c.bf16 %v406_v40, %v404_v38  ;;  %v284_v46 = vpop.f32.mrb[24].mxu0  ;;  %v2324_v47 = vpack.c.bf16 %v438_v41, %v436_v31  ;;  %v364_v48 = vpop.f32.mrb[24].mxu1 }
 0x135   :  { %v285_v49 = vadd.f32 %v284_v46, %v2248_v28  ;;  %v286_v50 = vpop.f32.mrb[25].mxu0  ;;  %v365_v51 = vadd.f32 %v364_v48, %v2248_v28  ;;  %v366_v52 = vpop.f32.mrb[25].mxu1 }
 0x136   :  { %v287_v53 = vadd.f32 %v286_v50, %v2252_v29  ;;  %v288_v54 = vpop.f32.mrb[26].mxu0  ;;  %765 = vmatprep.mubr.bf16.mxu1 %v458_v45  ;;  %v367_v55 = vadd.f32 %v366_v52, %v2252_v29  ;;  %v368_v56 = vpop.f32.mrb[26].mxu1 }
 0x137   :  { %v289_v57 = vadd.f32 %v288_v54, %v2248_v28  ;;  %v290_v58 = vpop.f32.mrb[27].mxu0  ;;  %766 = vmatmul.mubr.bf16.gmra.mrb[52].mxu1 %v457_v43  ;;  %v439_v60 = vmax.f32 %v365_v51, 0.0  ;;  %v369_v61 = vadd.f32 %v368_v56, %v2248_v28  ;;  %v370_v62 = vpop.f32.mrb[27].mxu1  ;;  %v407_v5 = vmax.f32 %v285_v49, 0.0 }
 0x138   :  { %v291_v1 = vadd.f32 %v290_v58, %v2252_v29  ;;  %v440_v2 = vmax.f32 %v367_v55, 0.0  ;;  %v371_v4 = vadd.f32 %v370_v62, %v2252_v29  ;;  %v408_v10 = vmax.f32 %v287_v53, 0.0 }
 0x139   :  { %v409_v6 = vmax.f32 %v289_v57, 0.0  ;;  %v441_v9 = vmax.f32 %v369_v61, 0.0 }
 0x13a   :  { %v410_v12 = vmax.f32 %v291_v1, 0.0  ;;  %v442_v13 = vmax.f32 %v371_v4, 0.0 }
 0x13b   :  { %v459_v14 = vpack.c.bf16 %v409_v6, %v407_v5  ;;  %v475_v15 = vpack.c.bf16 %v441_v9, %v439_v60 }
 0x13c   :  { %v460_v16 = vpack.c.bf16 %v410_v12, %v408_v10  ;;  %v294_v17 = vpop.f32.mrb[28].mxu0  ;;  %v476_v0 = vpack.c.bf16 %v442_v13, %v440_v2  ;;  %v374_v18 = vpop.f32.mrb[28].mxu1 }
 0x13d   :  { %v295_v19 = vadd.f32 %v294_v17, %v2248_v28  ;;  %v296_v20 = vpop.f32.mrb[29].mxu0  ;;  %v375_v21 = vadd.f32 %v374_v18, %v2248_v28  ;;  %v376_v22 = vpop.f32.mrb[29].mxu1 }
 0x13e   :  { %v297_v23 = vadd.f32 %v296_v20, %v2252_v29  ;;  %v298_v26 = vpop.f32.mrb[30].mxu0  ;;  %775 = vmatprep.mubr.bf16.mxu1 %v460_v16  ;;  %v377_v30 = vadd.f32 %v376_v22, %v2252_v29  ;;  %v378_v31 = vpop.f32.mrb[30].mxu1 }
 0x13f   :  { %v299_v33 = vadd.f32 %v298_v26, %v2248_v28  ;;  %v300_v34 = vpop.f32.mrb[31].mxu0  ;;  %776 = vmatmul.mubr.bf16.gmra.mrb[56].mxu1 %v459_v14  ;;  %v443_v35 = vmax.f32 %v375_v21, 0.0  ;;  %v379_v37 = vadd.f32 %v378_v31, %v2248_v28  ;;  %v380_v38 = vpop.f32.mrb[31].mxu1  ;;  %v411_v45 = vmax.f32 %v295_v19, 0.0  ;;  %v1866_v28 = vld [vmem:[#allocation5 + $0x78] sm:$0xff]  }
 0x140   :  { %v301_v40 = vadd.f32 %v300_v34, %v2252_v29  ;;  %v444_v41 = vmax.f32 %v377_v30, 0.0  ;;  %v381_v43 = vadd.f32 %v380_v38, %v2252_v29  ;;  %v412_v49 = vmax.f32 %v297_v23, 0.0  ;;  %v1867_v29 = vld [vmem:[#allocation5 + $0x38] sm:$0xff]   ;;  %1689 = vmatprep.subr.bf16.mxu0 %v1866_v28 }
 0x141   :  { %v413_v46 = vmax.f32 %v299_v33, 0.0  ;;  %v445_v48 = vmax.f32 %v379_v37, 0.0  ;;  %1690 = vmatpush3.bf16.msra.mxu0 %v1867_v29 }
 0x142   :  { %v414_v50 = vmax.f32 %v301_v40, 0.0  ;;  %v446_v51 = vmax.f32 %v381_v43, 0.0 }
 0x143   :  { %v461_v52 = vpack.c.bf16 %v413_v46, %v411_v45  ;;  %v477_v53 = vpack.c.bf16 %v445_v48, %v443_v35 }
 0x144   :  { %v462_v54 = vpack.c.bf16 %v414_v50, %v412_v49  ;;  %v478_v55 = vpack.c.bf16 %v446_v51, %v444_v41 }
 0x146   :  { %785 = vmatprep.mubr.bf16.mxu1 %v462_v54 }
 0x147   :  { %786 = vmatmul.mubr.bf16.gmra.mrb[60].mxu1 %v461_v52 }
 0x148   :  { %795 = vmatprep.mubr.bf16.mxu1 %v2264_v63 }
 0x14f   :  { %796 = vmatmul.mubr.bf16.gmra.mrb[64].mxu1 %v2262_v59  ;;  %v511_v59 = vld [vmem:[%s2485_s4] sm:$0x3] }
 0x150   :  { %805 = vmatprep.mubr.bf16.mxu1 %v2276_v36  ;;  %v2359_v63 = vrot.slane %v511_v59, %v111_v25 }
 0x157   :  { %806 = vmatmul.mubr.bf16.gmra.mrb[68].mxu1 %v2274_v32  ;;  %v2363_v32 = vrot.slane %v511_v59, %v115_v27 }
 0x158   :  { %815 = vmatprep.mubr.bf16.mxu1 %v2288_v7 }
 0x15f   :  { %816 = vmatmul.mubr.bf16.gmra.mrb[72].mxu1 %v2286_v3 }
 0x160   :  { %825 = vmatprep.mubr.bf16.mxu1 %v2300_v42 }
 0x167   :  { %826 = vmatmul.mubr.bf16.gmra.mrb[76].mxu1 %v2298_v39 }
 0x168   :  { %835 = vmatprep.mubr.bf16.mxu1 %v2312_v11 }
 0x16f   :  { %836 = vmatmul.mubr.bf16.gmra.mrb[80].mxu1 %v2310_v8 }
 0x170   :  { %845 = vmatprep.mubr.bf16.mxu1 %v2324_v47 }
 0x177   :  { %846 = vmatmul.mubr.bf16.gmra.mrb[84].mxu1 %v2322_v44 }
 0x178   :  { %855 = vmatprep.mubr.bf16.mxu1 %v476_v0 }
 0x17f   :  { %856 = vmatmul.mubr.bf16.gmra.mrb[88].mxu1 %v475_v15 }
 0x180   :  { %865 = vmatprep.mubr.bf16.mxu1 %v478_v55 }
 0x187   :  { %866 = vmatmul.mubr.bf16.gmra.mrb[92].mxu1 %v477_v53 }
 0x1e2   :  { %v717_v36 = vpop.f32.mrb[32].mxu1 }
 0x1e3   :  { %v718_v3 = vadd.f32 %v717_v36, %v2359_v63  ;;  %v719_v7 = vpop.f32.mrb[33].mxu1 }
 0x1e4   :  { %v720_v39 = vadd.f32 %v719_v7, %v2363_v32  ;;  %v721_v42 = vpop.f32.mrb[34].mxu1 }
 0x1e5   :  { %v722_v8 = vadd.f32 %v721_v42, %v2359_v63  ;;  %v723_v11 = vpop.f32.mrb[35].mxu1  ;;  %v876_v47 = vmax.f32 %v718_v3, 0.0 }
 0x1e6   :  { %v724_v44 = vadd.f32 %v723_v11, %v2363_v32  ;;  %v877_v25 = vmax.f32 %v720_v39, 0.0 }
 0x1e7   :  { %v878_v56 = vmax.f32 %v722_v8, 0.0 }
 0x1e8   :  { %v879_v57 = vmax.f32 %v724_v44, 0.0 }
 0x1e9   :  { %v940_v58 = vpack.c.bf16 %v878_v56, %v876_v47 }
 0x1ea   :  { %v941_v24 = vpack.c.bf16 %v879_v57, %v877_v25  ;;  %v727_v27 = vpop.f32.mrb[36].mxu1 }
 0x1eb   :  { %v728_v60 = vadd.f32 %v727_v27, %v2359_v63  ;;  %v729_v61 = vpop.f32.mrb[37].mxu1 }
 0x1ec   :  { %v730_v62 = vadd.f32 %v729_v61, %v2363_v32  ;;  %v731_v1 = vpop.f32.mrb[38].mxu1  ;;  %1139 = vmatprep.mubr.bf16.mxu0 %v941_v24 }
 0x1ed   :  { %v732_v2 = vadd.f32 %v731_v1, %v2359_v63  ;;  %v733_v4 = vpop.f32.mrb[39].mxu1  ;;  %1140 = vmatmul.mubr.bf16.vlgmr.msra.gmra.mrb[32].mxu0 %v940_v58  ;;  %v880_v6 = vmax.f32 %v728_v60, 0.0 }
 0x1ee   :  { %v734_v5 = vadd.f32 %v733_v4, %v2363_v32  ;;  %v881_v10 = vmax.f32 %v730_v62, 0.0 }
 0x1ef   :  { %v882_v9 = vmax.f32 %v732_v2, 0.0 }
 0x1f0   :  { %v883_v12 = vmax.f32 %v734_v5, 0.0 }
 0x1f1   :  { %v942_v13 = vpack.c.bf16 %v882_v9, %v880_v6 }
 0x1f2   :  { %v943_v14 = vpack.c.bf16 %v883_v12, %v881_v10  ;;  %v737_v15 = vpop.f32.mrb[40].mxu1 }
 0x1f3   :  { %v738_v16 = vadd.f32 %v737_v15, %v2359_v63  ;;  %v739_v17 = vpop.f32.mrb[41].mxu1 }
 0x1f4   :  { %v740_v0 = vadd.f32 %v739_v17, %v2363_v32  ;;  %v741_v18 = vpop.f32.mrb[42].mxu1  ;;  %1147 = vmatprep.mubr.bf16.mxu0 %v943_v14 }
 0x1f5   :  { %v742_v19 = vadd.f32 %v741_v18, %v2359_v63  ;;  %v743_v20 = vpop.f32.mrb[43].mxu1  ;;  %1148 = vmatmul.mubr.bf16.gmra.mrb[36].mxu0 %v942_v13  ;;  %v884_v22 = vmax.f32 %v738_v16, 0.0 }
 0x1f6   :  { %v744_v21 = vadd.f32 %v743_v20, %v2363_v32  ;;  %v885_v26 = vmax.f32 %v740_v0, 0.0 }
 0x1f7   :  { %v886_v23 = vmax.f32 %v742_v19, 0.0 }
 0x1f8   :  { %v887_v30 = vmax.f32 %v744_v21, 0.0 }
 0x1f9   :  { %v944_v31 = vpack.c.bf16 %v886_v23, %v884_v22 }
 0x1fa   :  { %v945_v33 = vpack.c.bf16 %v887_v30, %v885_v26  ;;  %v747_v34 = vpop.f32.mrb[44].mxu1 }
 0x1fb   :  { %v748_v35 = vadd.f32 %v747_v34, %v2359_v63  ;;  %v749_v37 = vpop.f32.mrb[45].mxu1 }
 0x1fc   :  { %v750_v38 = vadd.f32 %v749_v37, %v2363_v32  ;;  %v751_v40 = vpop.f32.mrb[46].mxu1  ;;  %1155 = vmatprep.mubr.bf16.mxu0 %v945_v33 }
 0x1fd   :  { %v752_v41 = vadd.f32 %v751_v40, %v2359_v63  ;;  %v753_v43 = vpop.f32.mrb[47].mxu1  ;;  %1156 = vmatmul.mubr.bf16.gmra.mrb[40].mxu0 %v944_v31  ;;  %v888_v46 = vmax.f32 %v748_v35, 0.0 }
 0x1fe   :  { %v754_v45 = vadd.f32 %v753_v43, %v2363_v32  ;;  %v889_v49 = vmax.f32 %v750_v38, 0.0 }
 0x1ff   :  { %v890_v48 = vmax.f32 %v752_v41, 0.0 }
 0x200   :  { %v891_v50 = vmax.f32 %v754_v45, 0.0 }
 0x201   :  { %v946_v51 = vpack.c.bf16 %v890_v48, %v888_v46 }
 0x202   :  { %v947_v52 = vpack.c.bf16 %v891_v50, %v889_v49  ;;  %v757_v53 = vpop.f32.mrb[48].mxu1 }
 0x203   :  { %v758_v54 = vadd.f32 %v757_v53, %v2359_v63  ;;  %v759_v55 = vpop.f32.mrb[49].mxu1 }
 0x204   :  { %v760_v28 = vadd.f32 %v759_v55, %v2363_v32  ;;  %v761_v29 = vpop.f32.mrb[50].mxu1  ;;  %1163 = vmatprep.mubr.bf16.mxu0 %v947_v52 }
 0x205   :  { %v762_v59 = vadd.f32 %v761_v29, %v2359_v63  ;;  %v763_v36 = vpop.f32.mrb[51].mxu1  ;;  %1164 = vmatmul.mubr.bf16.gmra.mrb[44].mxu0 %v946_v51  ;;  %v892_v7 = vmax.f32 %v758_v54, 0.0 }
 0x206   :  { %v764_v3 = vadd.f32 %v763_v36, %v2363_v32  ;;  %v893_v42 = vmax.f32 %v760_v28, 0.0 }
 0x207   :  { %v894_v39 = vmax.f32 %v762_v59, 0.0 }
 0x208   :  { %v895_v8 = vmax.f32 %v764_v3, 0.0 }
 0x209   :  { %v948_v11 = vpack.c.bf16 %v894_v39, %v892_v7 }
 0x20a   :  { %v949_v44 = vpack.c.bf16 %v895_v8, %v893_v42  ;;  %v767_v47 = vpop.f32.mrb[52].mxu1 }
 0x20b   :  { %v768_v56 = vadd.f32 %v767_v47, %v2359_v63  ;;  %v769_v25 = vpop.f32.mrb[53].mxu1 }
 0x20c   :  { %v770_v57 = vadd.f32 %v769_v25, %v2363_v32  ;;  %v771_v58 = vpop.f32.mrb[54].mxu1  ;;  %1171 = vmatprep.mubr.bf16.mxu0 %v949_v44 }
 0x20d   :  { %v772_v24 = vadd.f32 %v771_v58, %v2359_v63  ;;  %v773_v27 = vpop.f32.mrb[55].mxu1  ;;  %1172 = vmatmul.mubr.bf16.gmra.mrb[48].mxu0 %v948_v11  ;;  %v896_v61 = vmax.f32 %v768_v56, 0.0 }
 0x20e   :  { %v774_v60 = vadd.f32 %v773_v27, %v2363_v32  ;;  %v897_v1 = vmax.f32 %v770_v57, 0.0 }
 0x20f   :  { %v898_v62 = vmax.f32 %v772_v24, 0.0 }
 0x210   :  { %v899_v2 = vmax.f32 %v774_v60, 0.0 }
 0x211   :  { %v950_v4 = vpack.c.bf16 %v898_v62, %v896_v61 }
 0x212   :  { %v951_v5 = vpack.c.bf16 %v899_v2, %v897_v1  ;;  %v777_v6 = vpop.f32.mrb[56].mxu1 }
 0x213   :  { %v778_v9 = vadd.f32 %v777_v6, %v2359_v63  ;;  %v779_v10 = vpop.f32.mrb[57].mxu1 }
 0x214   :  { %v780_v12 = vadd.f32 %v779_v10, %v2363_v32  ;;  %v781_v13 = vpop.f32.mrb[58].mxu1  ;;  %1179 = vmatprep.mubr.bf16.mxu0 %v951_v5 }
 0x215   :  { %v782_v14 = vadd.f32 %v781_v13, %v2359_v63  ;;  %v783_v15 = vpop.f32.mrb[59].mxu1  ;;  %1180 = vmatmul.mubr.bf16.gmra.mrb[52].mxu0 %v950_v4  ;;  %v900_v17 = vmax.f32 %v778_v9, 0.0 }
 0x216   :  { %v784_v16 = vadd.f32 %v783_v15, %v2363_v32  ;;  %v901_v18 = vmax.f32 %v780_v12, 0.0 }
 0x217   :  { %v902_v0 = vmax.f32 %v782_v14, 0.0 }
 0x218   :  { %v903_v19 = vmax.f32 %v784_v16, 0.0 }
 0x219   :  { %v952_v20 = vpack.c.bf16 %v902_v0, %v900_v17 }
 0x21a   :  { %v953_v21 = vpack.c.bf16 %v903_v19, %v901_v18  ;;  %v787_v22 = vpop.f32.mrb[60].mxu1 }
 0x21b   :  { %v788_v23 = vadd.f32 %v787_v22, %v2359_v63  ;;  %v789_v26 = vpop.f32.mrb[61].mxu1 }
 0x21c   :  { %v790_v30 = vadd.f32 %v789_v26, %v2363_v32  ;;  %v791_v31 = vpop.f32.mrb[62].mxu1  ;;  %1187 = vmatprep.mubr.bf16.mxu0 %v953_v21 }
 0x21d   :  { %v792_v33 = vadd.f32 %v791_v31, %v2359_v63  ;;  %v793_v34 = vpop.f32.mrb[63].mxu1  ;;  %1188 = vmatmul.mubr.bf16.gmra.mrb[56].mxu0 %v952_v20  ;;  %v904_v37 = vmax.f32 %v788_v23, 0.0 }
 0x21e   :  { %v794_v35 = vadd.f32 %v793_v34, %v2363_v32  ;;  %v905_v40 = vmax.f32 %v790_v30, 0.0 }
 0x21f   :  { %v906_v38 = vmax.f32 %v792_v33, 0.0 }
 0x220   :  { %v907_v41 = vmax.f32 %v794_v35, 0.0 }
 0x221   :  { %v954_v43 = vpack.c.bf16 %v906_v38, %v904_v37 }
 0x222   :  { %v955_v45 = vpack.c.bf16 %v907_v41, %v905_v40  ;;  %v797_v46 = vpop.f32.mrb[64].mxu1 }
 0x223   :  { %v798_v48 = vadd.f32 %v797_v46, %v2359_v63  ;;  %v799_v49 = vpop.f32.mrb[65].mxu1 }
 0x224   :  { %v800_v50 = vadd.f32 %v799_v49, %v2363_v32  ;;  %v801_v51 = vpop.f32.mrb[66].mxu1  ;;  %1195 = vmatprep.mubr.bf16.mxu0 %v955_v45 }
 0x225   :  { %v802_v52 = vadd.f32 %v801_v51, %v2359_v63  ;;  %v803_v53 = vpop.f32.mrb[67].mxu1  ;;  %1196 = vmatmul.mubr.bf16.gmra.mrb[60].mxu0 %v954_v43  ;;  %v908_v55 = vmax.f32 %v798_v48, 0.0 }
 0x226   :  { %v804_v54 = vadd.f32 %v803_v53, %v2363_v32  ;;  %v909_v29 = vmax.f32 %v800_v50, 0.0 }
 0x227   :  { %v910_v28 = vmax.f32 %v802_v52, 0.0 }
 0x228   :  { %v911_v59 = vmax.f32 %v804_v54, 0.0 }
 0x229   :  { %v956_v36 = vpack.c.bf16 %v910_v28, %v908_v55 }
 0x22a   :  { %v957_v3 = vpack.c.bf16 %v911_v59, %v909_v29  ;;  %v807_v7 = vpop.f32.mrb[68].mxu1 }
 0x22b   :  { %v808_v39 = vadd.f32 %v807_v7, %v2359_v63  ;;  %v809_v42 = vpop.f32.mrb[69].mxu1 }
 0x22c   :  { %v810_v8 = vadd.f32 %v809_v42, %v2363_v32  ;;  %v811_v11 = vpop.f32.mrb[70].mxu1  ;;  %1203 = vmatprep.mubr.bf16.mxu0 %v957_v3 }
 0x22d   :  { %v812_v44 = vadd.f32 %v811_v11, %v2359_v63  ;;  %v813_v47 = vpop.f32.mrb[71].mxu1  ;;  %1204 = vmatmul.mubr.bf16.gmra.mrb[64].mxu0 %v956_v36  ;;  %v912_v25 = vmax.f32 %v808_v39, 0.0 }
 0x22e   :  { %v814_v56 = vadd.f32 %v813_v47, %v2363_v32  ;;  %v913_v58 = vmax.f32 %v810_v8, 0.0 }
 0x22f   :  { %v914_v57 = vmax.f32 %v812_v44, 0.0 }
 0x230   :  { %v915_v24 = vmax.f32 %v814_v56, 0.0 }
 0x231   :  { %v958_v27 = vpack.c.bf16 %v914_v57, %v912_v25 }
 0x232   :  { %v959_v60 = vpack.c.bf16 %v915_v24, %v913_v58  ;;  %v817_v61 = vpop.f32.mrb[72].mxu1 }
 0x233   :  { %v818_v62 = vadd.f32 %v817_v61, %v2359_v63  ;;  %v819_v1 = vpop.f32.mrb[73].mxu1 }
 0x234   :  { %v820_v2 = vadd.f32 %v819_v1, %v2363_v32  ;;  %v821_v4 = vpop.f32.mrb[74].mxu1  ;;  %1211 = vmatprep.mubr.bf16.mxu0 %v959_v60 }
 0x235   :  { %v822_v5 = vadd.f32 %v821_v4, %v2359_v63  ;;  %v823_v6 = vpop.f32.mrb[75].mxu1  ;;  %1212 = vmatmul.mubr.bf16.gmra.mrb[68].mxu0 %v958_v27  ;;  %v916_v10 = vmax.f32 %v818_v62, 0.0 }
 0x236   :  { %v824_v9 = vadd.f32 %v823_v6, %v2363_v32  ;;  %v917_v13 = vmax.f32 %v820_v2, 0.0 }
 0x237   :  { %v918_v12 = vmax.f32 %v822_v5, 0.0 }
 0x238   :  { %v919_v14 = vmax.f32 %v824_v9, 0.0 }
 0x239   :  { %v960_v15 = vpack.c.bf16 %v918_v12, %v916_v10 }
 0x23a   :  { %v961_v16 = vpack.c.bf16 %v919_v14, %v917_v13  ;;  %v827_v17 = vpop.f32.mrb[76].mxu1 }
 0x23b   :  { %v828_v0 = vadd.f32 %v827_v17, %v2359_v63  ;;  %v829_v18 = vpop.f32.mrb[77].mxu1 }
 0x23c   :  { %v830_v19 = vadd.f32 %v829_v18, %v2363_v32  ;;  %v831_v20 = vpop.f32.mrb[78].mxu1  ;;  %1219 = vmatprep.mubr.bf16.mxu0 %v961_v16 }
 0x23d   :  { %v832_v21 = vadd.f32 %v831_v20, %v2359_v63  ;;  %v833_v22 = vpop.f32.mrb[79].mxu1  ;;  %1220 = vmatmul.mubr.bf16.gmra.mrb[72].mxu0 %v960_v15  ;;  %v920_v26 = vmax.f32 %v828_v0, 0.0 }
 0x23e   :  { %v834_v23 = vadd.f32 %v833_v22, %v2363_v32  ;;  %v921_v31 = vmax.f32 %v830_v19, 0.0 }
 0x23f   :  { %v922_v30 = vmax.f32 %v832_v21, 0.0 }
 0x240   :  { %v923_v33 = vmax.f32 %v834_v23, 0.0 }
 0x241   :  { %v962_v34 = vpack.c.bf16 %v922_v30, %v920_v26 }
 0x242   :  { %v963_v35 = vpack.c.bf16 %v923_v33, %v921_v31  ;;  %v837_v37 = vpop.f32.mrb[80].mxu1 }
 0x243   :  { %v838_v38 = vadd.f32 %v837_v37, %v2359_v63  ;;  %v839_v40 = vpop.f32.mrb[81].mxu1 }
 0x244   :  { %v840_v41 = vadd.f32 %v839_v40, %v2363_v32  ;;  %v841_v43 = vpop.f32.mrb[82].mxu1  ;;  %1227 = vmatprep.mubr.bf16.mxu0 %v963_v35 }
 0x245   :  { %v842_v45 = vadd.f32 %v841_v43, %v2359_v63  ;;  %v843_v46 = vpop.f32.mrb[83].mxu1  ;;  %1228 = vmatmul.mubr.bf16.gmra.mrb[76].mxu0 %v962_v34  ;;  %v924_v49 = vmax.f32 %v838_v38, 0.0 }
 0x246   :  { %v844_v48 = vadd.f32 %v843_v46, %v2363_v32  ;;  %v925_v51 = vmax.f32 %v840_v41, 0.0 }
 0x247   :  { %v926_v50 = vmax.f32 %v842_v45, 0.0 }
 0x248   :  { %v927_v52 = vmax.f32 %v844_v48, 0.0 }
 0x249   :  { %v964_v53 = vpack.c.bf16 %v926_v50, %v924_v49 }
 0x24a   :  { %v965_v54 = vpack.c.bf16 %v927_v52, %v925_v51  ;;  %v847_v55 = vpop.f32.mrb[84].mxu1 }
 0x24b   :  { %v848_v28 = vadd.f32 %v847_v55, %v2359_v63  ;;  %v849_v29 = vpop.f32.mrb[85].mxu1 }
 0x24c   :  { %v850_v59 = vadd.f32 %v849_v29, %v2363_v32  ;;  %v851_v36 = vpop.f32.mrb[86].mxu1  ;;  %1235 = vmatprep.mubr.bf16.mxu0 %v965_v54 }
 0x24d   :  { %v852_v3 = vadd.f32 %v851_v36, %v2359_v63  ;;  %v853_v7 = vpop.f32.mrb[87].mxu1  ;;  %1236 = vmatmul.mubr.bf16.gmra.mrb[80].mxu0 %v964_v53  ;;  %v928_v42 = vmax.f32 %v848_v28, 0.0 }
 0x24e   :  { %v854_v39 = vadd.f32 %v853_v7, %v2363_v32  ;;  %v929_v11 = vmax.f32 %v850_v59, 0.0 }
 0x24f   :  { %v930_v8 = vmax.f32 %v852_v3, 0.0 }
 0x250   :  { %v931_v44 = vmax.f32 %v854_v39, 0.0 }
 0x251   :  { %v966_v47 = vpack.c.bf16 %v930_v8, %v928_v42 }
 0x252   :  { %v967_v56 = vpack.c.bf16 %v931_v44, %v929_v11  ;;  %v857_v25 = vpop.f32.mrb[88].mxu1 }
 0x253   :  { %v858_v57 = vadd.f32 %v857_v25, %v2359_v63  ;;  %v859_v58 = vpop.f32.mrb[89].mxu1 }
 0x254   :  { %v860_v24 = vadd.f32 %v859_v58, %v2363_v32  ;;  %v861_v27 = vpop.f32.mrb[90].mxu1  ;;  %1243 = vmatprep.mubr.bf16.mxu0 %v967_v56 }
 0x255   :  { %v862_v60 = vadd.f32 %v861_v27, %v2359_v63  ;;  %v863_v61 = vpop.f32.mrb[91].mxu1  ;;  %1244 = vmatmul.mubr.bf16.gmra.mrb[84].mxu0 %v966_v47  ;;  %v932_v1 = vmax.f32 %v858_v57, 0.0 }
 0x256   :  { %v864_v62 = vadd.f32 %v863_v61, %v2363_v32  ;;  %v933_v4 = vmax.f32 %v860_v24, 0.0 }
 0x257   :  { %v934_v2 = vmax.f32 %v862_v60, 0.0 }
 0x258   :  { %v935_v5 = vmax.f32 %v864_v62, 0.0 }
 0x259   :  { %v968_v6 = vpack.c.bf16 %v934_v2, %v932_v1 }
 0x25a   :  { %v969_v9 = vpack.c.bf16 %v935_v5, %v933_v4  ;;  %v867_v10 = vpop.f32.mrb[92].mxu1 }
 0x25b   :  { %v868_v12 = vadd.f32 %v867_v10, %v2359_v63  ;;  %v869_v13 = vpop.f32.mrb[93].mxu1 }
 0x25c   :  { %v870_v14 = vadd.f32 %v869_v13, %v2363_v32  ;;  %v871_v15 = vpop.f32.mrb[94].mxu1  ;;  %1251 = vmatprep.mubr.bf16.mxu0 %v969_v9 }
 0x25d   :  { %v872_v16 = vadd.f32 %v871_v15, %v2359_v63  ;;  %v873_v17 = vpop.f32.mrb[95].mxu1  ;;  %1252 = vmatmul.mubr.bf16.gmra.mrb[88].mxu0 %v968_v6  ;;  %v936_v18 = vmax.f32 %v868_v12, 0.0  ;;  %v2432_v63 = vld [vmem:[%s2487_s6] ss:$0 sm:$0xff] }
 0x25e   :  { %v874_v0 = vadd.f32 %v873_v17, %v2363_v32  ;;  %v937_v20 = vmax.f32 %v870_v14, 0.0 }
 0x25f   :  { %v938_v19 = vmax.f32 %v872_v16, 0.0 }
 0x260   :  { %v939_v21 = vmax.f32 %v874_v0, 0.0 }
 0x261   :  { %v970_v22 = vpack.c.bf16 %v938_v19, %v936_v18 }
 0x262   :  { %v971_v23 = vpack.c.bf16 %v939_v21, %v937_v20 }
 0x264   :  { %1259 = vmatprep.mubr.bf16.mxu0 %v971_v23 }
 0x265   :  { %1260 = vmatmul.mubr.bf16.gmra.mrb[92].mxu0 %v970_v22 }
 0x2c0   :  { %v1691_v26 = vpop.f32.mrb[32].mxu0 }
 0x2c1   :  { %v1692_v30 = vpop.f32.mrb[33].mxu0 }
 0x2c2   :  { %v1693_v31 = vadd.f32 %v1692_v30, %v1691_v26  ;;  %v1694_v33 = vpop.f32.mrb[34].mxu0 }
 0x2c3   :  { %v1695_v34 = vpop.f32.mrb[35].mxu0 }
 0x2c4   :  { %v1696_v35 = vadd.f32 %v1695_v34, %v1694_v33  ;;  %v1142_v32 = vadd.f32 %v1693_v31, %v2432_v63 }
 0x2c6   :  { %v1145_v37 = vadd.f32 %v1696_v35, %v2432_v63 }
 0x2c8   :  { %v1583_v38 = vpack.c.bf16 %v1145_v37, %v1142_v32  ;;  %v1697_v40 = vpop.f32.mrb[36].mxu0 }
 0x2c9   :  { %v1698_v41 = vpop.f32.mrb[37].mxu0 }
 0x2ca   :  { %1584 = vst [vmem:[#allocation7] sm:$0xff] %v1583_v38   ;;  %v1699_v43 = vadd.f32 %v1698_v41, %v1697_v40  ;;  %v1700_v45 = vpop.f32.mrb[38].mxu0 }
 0x2cb   :  { %v1701_v46 = vpop.f32.mrb[39].mxu0 }
 0x2cc   :  { %v1702_v48 = vadd.f32 %v1701_v46, %v1700_v45  ;;  %v1150_v49 = vadd.f32 %v1699_v43, %v2432_v63 }
 0x2ce   :  { %v1153_v50 = vadd.f32 %v1702_v48, %v2432_v63 }
 0x2d0   :  { %v1588_v51 = vpack.c.bf16 %v1153_v50, %v1150_v49  ;;  %v1703_v52 = vpop.f32.mrb[40].mxu0 }
 0x2d1   :  { %v1704_v53 = vpop.f32.mrb[41].mxu0 }
 0x2d2   :  { %1660 = vst [vmem:[#allocation7 + $0x8] sm:$0xff] %v1588_v51   ;;  %v1705_v54 = vadd.f32 %v1704_v53, %v1703_v52  ;;  %v1706_v55 = vpop.f32.mrb[42].mxu0 }
 0x2d3   :  { %v1707_v28 = vpop.f32.mrb[43].mxu0 }
 0x2d4   :  { %v1708_v29 = vadd.f32 %v1707_v28, %v1706_v55  ;;  %v1158_v59 = vadd.f32 %v1705_v54, %v2432_v63 }
 0x2d6   :  { %v1161_v36 = vadd.f32 %v1708_v29, %v2432_v63 }
 0x2d8   :  { %v1593_v3 = vpack.c.bf16 %v1161_v36, %v1158_v59  ;;  %v1709_v7 = vpop.f32.mrb[44].mxu0 }
 0x2d9   :  { %v1710_v39 = vpop.f32.mrb[45].mxu0 }
 0x2da   :  { %1661 = vst [vmem:[#allocation7 + $0x10] sm:$0xff] %v1593_v3   ;;  %v1711_v42 = vadd.f32 %v1710_v39, %v1709_v7  ;;  %v1712_v8 = vpop.f32.mrb[46].mxu0 }
 0x2db   :  { %v1713_v11 = vpop.f32.mrb[47].mxu0 }
 0x2dc   :  { %v1714_v44 = vadd.f32 %v1713_v11, %v1712_v8  ;;  %v1166_v47 = vadd.f32 %v1711_v42, %v2432_v63 }
 0x2de   :  { %v1169_v56 = vadd.f32 %v1714_v44, %v2432_v63 }
 0x2e0   :  { %v1598_v25 = vpack.c.bf16 %v1169_v56, %v1166_v47  ;;  %v1715_v57 = vpop.f32.mrb[48].mxu0 }
 0x2e1   :  { %v1716_v58 = vpop.f32.mrb[49].mxu0 }
 0x2e2   :  { %1662 = vst [vmem:[#allocation7 + $0x18] sm:$0xff] %v1598_v25   ;;  %v1717_v24 = vadd.f32 %v1716_v58, %v1715_v57  ;;  %v1718_v27 = vpop.f32.mrb[50].mxu0 }
 0x2e3   :  { %v1719_v60 = vpop.f32.mrb[51].mxu0 }
 0x2e4   :  { %v1720_v61 = vadd.f32 %v1719_v60, %v1718_v27  ;;  %v1174_v62 = vadd.f32 %v1717_v24, %v2432_v63 }
 0x2e6   :  { %v1177_v1 = vadd.f32 %v1720_v61, %v2432_v63 }
 0x2e8   :  { %v1603_v2 = vpack.c.bf16 %v1177_v1, %v1174_v62  ;;  %v1721_v4 = vpop.f32.mrb[52].mxu0 }
 0x2e9   :  { %v1722_v5 = vpop.f32.mrb[53].mxu0 }
 0x2ea   :  { %1663 = vst [vmem:[#allocation7 + $0x20] sm:$0xff] %v1603_v2   ;;  %v1723_v6 = vadd.f32 %v1722_v5, %v1721_v4  ;;  %v1724_v9 = vpop.f32.mrb[54].mxu0 }
 0x2eb   :  { %v1725_v10 = vpop.f32.mrb[55].mxu0 }
 0x2ec   :  { %v1726_v12 = vadd.f32 %v1725_v10, %v1724_v9  ;;  %v1182_v13 = vadd.f32 %v1723_v6, %v2432_v63 }
 0x2ee   :  { %v1185_v14 = vadd.f32 %v1726_v12, %v2432_v63 }
 0x2f0   :  { %v1608_v15 = vpack.c.bf16 %v1185_v14, %v1182_v13  ;;  %v1727_v16 = vpop.f32.mrb[56].mxu0 }
 0x2f1   :  { %v1728_v17 = vpop.f32.mrb[57].mxu0 }
 0x2f2   :  { %1664 = vst [vmem:[#allocation7 + $0x28] sm:$0xff] %v1608_v15   ;;  %v1729_v0 = vadd.f32 %v1728_v17, %v1727_v16  ;;  %v1730_v18 = vpop.f32.mrb[58].mxu0 }
 0x2f3   :  { %v1731_v19 = vpop.f32.mrb[59].mxu0 }
 0x2f4   :  { %v1732_v20 = vadd.f32 %v1731_v19, %v1730_v18  ;;  %v1190_v21 = vadd.f32 %v1729_v0, %v2432_v63 }
 0x2f6   :  { %v1193_v22 = vadd.f32 %v1732_v20, %v2432_v63 }
 0x2f8   :  { %v1613_v23 = vpack.c.bf16 %v1193_v22, %v1190_v21  ;;  %v1733_v26 = vpop.f32.mrb[60].mxu0 }
 0x2f9   :  { %v1734_v30 = vpop.f32.mrb[61].mxu0 }
 0x2fa   :  { %1665 = vst [vmem:[#allocation7 + $0x30] sm:$0xff] %v1613_v23   ;;  %v1735_v31 = vadd.f32 %v1734_v30, %v1733_v26  ;;  %v1736_v33 = vpop.f32.mrb[62].mxu0 }
 0x2fb   :  { %v1737_v34 = vpop.f32.mrb[63].mxu0 }
 0x2fc   :  { %v1738_v35 = vadd.f32 %v1737_v34, %v1736_v33  ;;  %v1198_v32 = vadd.f32 %v1735_v31, %v2432_v63 }
 0x2fe   :  { %v1201_v37 = vadd.f32 %v1738_v35, %v2432_v63 }
 0x300   :  { %v1618_v38 = vpack.c.bf16 %v1201_v37, %v1198_v32  ;;  %v1739_v40 = vpop.f32.mrb[64].mxu0 }
 0x301   :  { %v1740_v41 = vpop.f32.mrb[65].mxu0 }
 0x302   :  { %1666 = vst [vmem:[#allocation7 + $0x38] sm:$0xff] %v1618_v38   ;;  %v1741_v43 = vadd.f32 %v1740_v41, %v1739_v40  ;;  %v1742_v45 = vpop.f32.mrb[66].mxu0 }
 0x303   :  { %v1743_v46 = vpop.f32.mrb[67].mxu0 }
 0x304   :  { %v1744_v48 = vadd.f32 %v1743_v46, %v1742_v45  ;;  %v1206_v49 = vadd.f32 %v1741_v43, %v2432_v63 }
 0x306   :  { %v1209_v50 = vadd.f32 %v1744_v48, %v2432_v63 }
 0x308   :  { %v1623_v51 = vpack.c.bf16 %v1209_v50, %v1206_v49  ;;  %v1745_v52 = vpop.f32.mrb[68].mxu0 }
 0x309   :  { %v1746_v53 = vpop.f32.mrb[69].mxu0 }
 0x30a   :  { %1667 = vst [vmem:[#allocation7 + $0x40] sm:$0xff] %v1623_v51   ;;  %v1747_v54 = vadd.f32 %v1746_v53, %v1745_v52  ;;  %v1748_v55 = vpop.f32.mrb[70].mxu0 }
 0x30b   :  { %v1749_v28 = vpop.f32.mrb[71].mxu0 }
 0x30c   :  { %v1750_v29 = vadd.f32 %v1749_v28, %v1748_v55  ;;  %v1214_v59 = vadd.f32 %v1747_v54, %v2432_v63 }
 0x30e   :  { %v1217_v36 = vadd.f32 %v1750_v29, %v2432_v63 }
 0x310   :  { %v1628_v3 = vpack.c.bf16 %v1217_v36, %v1214_v59  ;;  %v1751_v7 = vpop.f32.mrb[72].mxu0 }
 0x311   :  { %v1752_v39 = vpop.f32.mrb[73].mxu0 }
 0x312   :  { %1668 = vst [vmem:[#allocation7 + $0x48] sm:$0xff] %v1628_v3   ;;  %v1753_v42 = vadd.f32 %v1752_v39, %v1751_v7  ;;  %v1754_v8 = vpop.f32.mrb[74].mxu0 }
 0x313   :  { %v1755_v11 = vpop.f32.mrb[75].mxu0 }
 0x314   :  { %v1756_v44 = vadd.f32 %v1755_v11, %v1754_v8  ;;  %v1222_v47 = vadd.f32 %v1753_v42, %v2432_v63 }
 0x316   :  { %v1225_v56 = vadd.f32 %v1756_v44, %v2432_v63 }
 0x318   :  { %v1633_v25 = vpack.c.bf16 %v1225_v56, %v1222_v47  ;;  %v1757_v57 = vpop.f32.mrb[76].mxu0 }
 0x319   :  { %v1758_v58 = vpop.f32.mrb[77].mxu0 }
 0x31a   :  { %1669 = vst [vmem:[#allocation7 + $0x50] sm:$0xff] %v1633_v25   ;;  %v1759_v24 = vadd.f32 %v1758_v58, %v1757_v57  ;;  %v1760_v27 = vpop.f32.mrb[78].mxu0 }
 0x31b   :  { %v1761_v60 = vpop.f32.mrb[79].mxu0 }
 0x31c   :  { %v1762_v61 = vadd.f32 %v1761_v60, %v1760_v27  ;;  %v1230_v62 = vadd.f32 %v1759_v24, %v2432_v63 }
 0x31e   :  { %v1233_v1 = vadd.f32 %v1762_v61, %v2432_v63 }
 0x320   :  { %v1638_v2 = vpack.c.bf16 %v1233_v1, %v1230_v62  ;;  %v1763_v4 = vpop.f32.mrb[80].mxu0 }
 0x321   :  { %v1764_v5 = vpop.f32.mrb[81].mxu0 }
 0x322   :  { %1670 = vst [vmem:[#allocation7 + $0x58] sm:$0xff] %v1638_v2   ;;  %v1765_v6 = vadd.f32 %v1764_v5, %v1763_v4  ;;  %v1766_v9 = vpop.f32.mrb[82].mxu0 }
 0x323   :  { %v1767_v10 = vpop.f32.mrb[83].mxu0 }
 0x324   :  { %v1768_v12 = vadd.f32 %v1767_v10, %v1766_v9  ;;  %v1238_v13 = vadd.f32 %v1765_v6, %v2432_v63 }
 0x326   :  { %v1241_v14 = vadd.f32 %v1768_v12, %v2432_v63 }
 0x328   :  { %v1643_v15 = vpack.c.bf16 %v1241_v14, %v1238_v13  ;;  %v1769_v16 = vpop.f32.mrb[84].mxu0 }
 0x329   :  { %v1770_v17 = vpop.f32.mrb[85].mxu0 }
 0x32a   :  { %1671 = vst [vmem:[#allocation7 + $0x60] sm:$0xff] %v1643_v15   ;;  %v1771_v0 = vadd.f32 %v1770_v17, %v1769_v16  ;;  %v1772_v18 = vpop.f32.mrb[86].mxu0 }
 0x32b   :  { %v1773_v19 = vpop.f32.mrb[87].mxu0 }
 0x32c   :  { %v1774_v20 = vadd.f32 %v1773_v19, %v1772_v18  ;;  %v1246_v21 = vadd.f32 %v1771_v0, %v2432_v63 }
 0x32e   :  { %v1249_v22 = vadd.f32 %v1774_v20, %v2432_v63 }
 0x330   :  { %v1648_v23 = vpack.c.bf16 %v1249_v22, %v1246_v21  ;;  %v1775_v26 = vpop.f32.mrb[88].mxu0 }
 0x331   :  { %v1776_v30 = vpop.f32.mrb[89].mxu0 }
 0x332   :  { %1672 = vst [vmem:[#allocation7 + $0x68] sm:$0xff] %v1648_v23   ;;  %v1777_v31 = vadd.f32 %v1776_v30, %v1775_v26  ;;  %v1778_v33 = vpop.f32.mrb[90].mxu0 }
 0x333   :  { %v1779_v34 = vpop.f32.mrb[91].mxu0 }
 0x334   :  { %v1780_v35 = vadd.f32 %v1779_v34, %v1778_v33  ;;  %v1254_v32 = vadd.f32 %v1777_v31, %v2432_v63 }
 0x336   :  { %v1257_v37 = vadd.f32 %v1780_v35, %v2432_v63 }
 0x338   :  { %v1653_v38 = vpack.c.bf16 %v1257_v37, %v1254_v32  ;;  %v1781_v40 = vpop.f32.mrb[92].mxu0 }
 0x339   :  { %v1782_v41 = vpop.f32.mrb[93].mxu0 }
 0x33a   :  { %1673 = vst [vmem:[#allocation7 + $0x70] sm:$0xff] %v1653_v38   ;;  %v1783_v43 = vadd.f32 %v1782_v41, %v1781_v40  ;;  %v1784_v45 = vpop.f32.mrb[94].mxu0 }
 0x33b   :  { %v1785_v46 = vpop.f32.mrb[95].mxu0 }
 0x33c   :  { %v1786_v48 = vadd.f32 %v1785_v46, %v1784_v45  ;;  %v1262_v49 = vadd.f32 %v1783_v43, %v2432_v63 }
 0x33e   :  { %v1265_v50 = vadd.f32 %v1786_v48, %v2432_v63 }
 0x340   :  { %v1658_v51 = vpack.c.bf16 %v1265_v50, %v1262_v49 }
 0x342   :  { %1674 = vst [vmem:[#allocation7 + $0x78] sm:$0xff] %v1658_v51  }
 0x343   :  { %1432 = vsyncadd [#allocation4], 448  ;;  %s1947_s6 = smov [#allocation7]  }
 0x344   :  { %s1433_s19 = sshll.u32 %s1947_s6, 4  ;;  %s1434_s19 = int_to_ptr.vmem [resolvable:$true] %s1433_s19 }
 0x345   :  { %s1912_s20 = scalar_lea.vmem %s1434_s19, 1600  ;;  %s1916_s21 = scalar_lea.vmem %s1434_s19, 2048 }
 0x346   :  { %p1913_p2 = scmp.ne.s32.totalorder %s1434_s19, %s1912_s20  ;;  %p1917_p3 = scmp.lt.s32.totalorder %s1434_s19, %s1434_s19 }
 0x347   :  { %p1918_p4 = scmp.lt.s32.totalorder %s1916_s21, %s1912_s20 }
 0x349   :  { %p1919_p5 = por %p1918_p4, %p1917_p3 }
 0x34b   :  { %p1920_p6 = pnand %p1919_p5, %p1913_p2 }
 0x34d   :  { %1923 = shalt.err (!%p1920_p6)
}
 0x34e   :  { %s1924_s24 = scalar_lea.hbm %s2488_s7, 1600 }
 0x34f   :  { %p1925_p7 = scmp.ne.s32.totalorder %s2488_s7, %s1924_s24  ;;  %p1928_p8 = scmp.lt.u32.totalorder %s1924_s24, %s2488_s7 }
 0x351   :  { %p1930_p9 = pnand %p1928_p8, %p1925_p7 }
 0x353   :  { %1933 = shalt.err (!%p1930_p9)
}
 0x354   :  { %1439 = dma.vmem_to_hbm [thread:$0]  %s1434_s19, 1600, %s2488_s7, [#allocation4], %s1944_s1, %s1944_s1, %s1945_s25  }
 0x355   :  { %1938 = dma.done.wait [#allocation4], 2048  }
 0x356   :  { %1939 = vsyncadd [#allocation4], 4294965248 }
 0x357   :  { %1443 = vsyncpa [#allocation3], 1 }
 0x358   :  { %1444 = vsyncpa [#allocation6], 1 }
 0x359   :  { %1445 = vsyncpa [#allocation4], 1 }

</bundles_post_ra>
